<compile_context>
chip_gen: v7x
topology: tpu7x:2x2x1
jax: 0.10.0
libtpu: 0.0.40
codegen_flags: <defaults>
</compile_context>

<pallas_src>
from functools import partial

import jax
import jax.numpy as jnp
import numpy as np
from jax import lax
from jax.experimental import pallas as pl
from jax.experimental.pallas import tpu as pltpu


# ------------------------- Pallas kernels -------------------------

def encoder_blocks_kernel(
    x_in_ref, mass_ref, evals_ref, ops_ref,
    t_ref, pdw_re_ref, pdw_im_ref,
    w0a_ref, w0b_ref, w0c_ref, b0_ref,
    w1_ref, b1_ref, w2_ref, b2_ref,
    o_ref, x_sc,
):
    """Fused DiffusionNetBody blocks.  Grid = (encoder, block).

    Kernel-view shapes (padded width Wp):
      x_in (V,Wp), mass (V,1), evals (K,1), ops = [evecs;grad_re;grad_im] (3V,K),
      t/b* (1,Wp), pdw_* (Wp,2Wp), w0a/w0b/w0c/w1/w2 (Wp,Wp), o (V,Wp).
    """
    blk = pl.program_id(1)
    V, Wp = x_sc.shape

    # Start of a new encoder: load the post-input-linear features into the
    # resident VMEM residual stream.
    @pl.when(blk == 0)
    def _():
        x_sc[...] = x_in_ref[...]

    x = x_sc[...]                                                   # (V, Wp)

    # geometry.to_basis: x_spec = evecs^T (mass * x).  Contract over V with a
    # transposed-LHS matmul (no evecs.T operand shipped).
    evecs = ops_ref[0:V, :]                                         # (V, K)
    x_spec = lax.dot_general(
        evecs, mass_ref[...] * x,
        dimension_numbers=(((0,), (0,)), ((), ())),
        preferred_element_type=jnp.float32)                         # (K, Wp)

    # LaplacianBlock: spectral diffusion with learned per-channel time.
    x_spec = jnp.exp(-evals_ref[...] * jnp.abs(t_ref[...])) * x_spec

    # from_basis + complex gradient features in ONE stacked matmul:
    # [evecs; grad_re; grad_im] @ x_spec = [x_lap; xg_re; xg_im].
    fused = jnp.dot(ops_ref[...], x_spec,
                    preferred_element_type=jnp.float32)             # (3V, Wp)
    x_lap = fused[0 * V:1 * V, :]
    xg_re = fused[1 * V:2 * V, :]
    xg_im = fused[2 * V:3 * V, :]

    # PairwiseDot (linear_complex=True): two lane-dense matmuls produce
    # [b_re | b_im] with the 2x2 complex weight pre-packed at init.
    b = (jnp.dot(xg_re, pdw_re_ref[...], preferred_element_type=jnp.float32)
         + jnp.dot(xg_im, pdw_im_ref[...], preferred_element_type=jnp.float32))
    dots = jnp.tanh(xg_re * b[:, 0:Wp] + xg_im * b[:, Wp:2 * Wp])

    # MiniMLP([3W, W, W, W]); first layer split over the concat pieces
    # (x || x_lap || dots) so no in-kernel concatenate is needed.
    h = (jnp.dot(x, w0a_ref[...], preferred_element_type=jnp.float32)
         + jnp.dot(x_lap, w0b_ref[...], preferred_element_type=jnp.float32)
         + jnp.dot(dots, w0c_ref[...], preferred_element_type=jnp.float32)
         + b0_ref[...])
    h = jnp.maximum(h, 0.0)
    h = jnp.maximum(
        jnp.dot(h, w1_ref[...], preferred_element_type=jnp.float32) + b1_ref[...],
        0.0)
    h = jnp.dot(h, w2_ref[...], preferred_element_type=jnp.float32) + b2_ref[...]

    x_new = h + x                                                   # residual
    x_sc[...] = x_new

    @pl.when(blk == pl.num_programs(1) - 1)
    def _():
        o_ref[...] = x_new


def head_kernel(x_ref, w1_ref, b1_ref, w2_ref, b2_ref, w3_ref, b3_ref, o_ref):
    # fc1 -> fc2 -> fc3 (no activations, matching the PyTorch module), fused
    # into one launch; weights pre-transposed to (in, out).
    h = jnp.dot(x_ref[...], w1_ref[...], preferred_element_type=jnp.float32) + b1_ref[...]
    h = jnp.dot(h, w2_ref[...], preferred_element_type=jnp.float32) + b2_ref[...]
    o_ref[...] = jnp.dot(h, w3_ref[...], preferred_element_type=jnp.float32) + b3_ref[...]


# ------------------------- wrappers (glue) -------------------------

def fused_encoders(packed, x_in, mass, evals, ops):
    """One pallas_call for both encoders and all blocks."""
    E, V, Wp = x_in.shape
    NB = packed["enc_t"].shape[1]

    def inv(shape):     # per-encoder invariant (E, a, b): re-fetched only on e change
        return pl.BlockSpec((pl.Squeezed(),) + tuple(shape[1:]),
                            lambda e, b: (e, 0, 0))

    def perblk(shape):  # per-block weights (E, NB, a, b): streamed each block
        return pl.BlockSpec((pl.Squeezed(), pl.Squeezed()) + tuple(shape[2:]),
                            lambda e, b: (e, b, 0, 0))

    args = (x_in, mass, evals, ops,
            packed["enc_t"], packed["enc_pdw_re"], packed["enc_pdw_im"],
            packed["enc_w0a"], packed["enc_w0b"], packed["enc_w0c"], packed["enc_b0"],
            packed["enc_w1"], packed["enc_b1"], packed["enc_w2"], packed["enc_b2"])
    in_specs = ([inv(x_in.shape), inv(mass.shape), inv(evals.shape), inv(ops.shape)]
                + [perblk(a.shape) for a in args[4:]])

    return pl.pallas_call(
        encoder_blocks_kernel,
        out_shape=jax.ShapeDtypeStruct((E, V, Wp), jnp.float32),
        grid=(E, NB),
        in_specs=in_specs,
        out_specs=pl.BlockSpec((pl.Squeezed(), V, Wp), lambda e, b: (e, 0, 0)),
        scratch_shapes=[pltpu.VMEM((V, Wp), jnp.float32)],
        compiler_params=pltpu.CompilerParams(
            dimension_semantics=("parallel", "arbitrary"),
            vmem_limit_bytes=32 * 1024 * 1024,
        ),
    )(*args)


def head_forward(packed, x_head):
    vmem = pl.BlockSpec(memory_space=pltpu.MemorySpace.VMEM)
    return pl.pallas_call(
        head_kernel,
        out_shape=jax.ShapeDtypeStruct((x_head.shape[0], packed["fc3_w"].shape[1]),
                                       jnp.float32),
        in_specs=[vmem] * 7,
        out_specs=vmem,
    )(x_head, packed["fc1_w"], packed["fc1_b"], packed["fc2_w"], packed["fc2_b"],
      packed["fc3_w"], packed["fc3_b"])


def normalize_positions(pos):
    # geometry.normalize_positions: center and scale to unit max radius.
    pos = pos - jnp.mean(pos, axis=-2, keepdims=True)
    scale = jnp.max(jnp.linalg.norm(pos, axis=-1))
    return pos / scale


@partial(jax.jit, static_argnames=("width",))
def diffusionnet_ppi_forward(packed, p1, p2, ops1, ops2, x_head, *, width):
    verts1 = p1[:, 0:3]
    verts2 = p2[:, 0:3]
    V = verts1.shape[0]

    mass1, evals1, evecs1, gre1, gim1 = ops1
    mass2, evals2, evecs2, gre2, gim2 = ops2

    # Input linear (tiny, left to XLA) — padded lanes stay exactly zero.
    vn1 = normalize_positions(verts1)
    vn2 = normalize_positions(verts2)
    x_in = jnp.stack([vn1 @ packed["enc_w_in"][0] + packed["enc_b_in"][0],
                      vn2 @ packed["enc_w_in"][1] + packed["enc_b_in"][1]], axis=0)

    mass = jnp.stack([mass1, mass2], axis=0)[..., None]               # (2, V, 1)
    evals = jnp.stack([evals1, evals2], axis=0)[..., None]            # (2, K, 1)
    ops = jnp.stack([jnp.concatenate([evecs1, gre1, gim1], axis=0),
                     jnp.concatenate([evecs2, gre2, gim2], axis=0)], axis=0)  # (2,3V,K)

    x_out = fused_encoders(packed, x_in, mass, evals, ops)            # (2, V, Wp)
    x1 = x_out[0, :, :width]
    x2 = x_out[1, :, :width]

    x0 = head_forward(packed, x_head)
    return x0, x1, x2


# ------------------------- parameter init & packing -------------------------

def _linear_init(key, dout, din):
    kw, kb = jax.random.split(key)
    bound = 1.0 / jnp.sqrt(jnp.float32(din))
    w = jax.random.uniform(kw, (dout, din), jnp.float32, -bound, bound)
    b = jax.random.uniform(kb, (dout,), jnp.float32, -bound, bound)
    return w, b


def init_encoder(key, input_size=3, width=32, num_blocks=4):
    """PyTorch-layout parameters (used by the pure-JAX reference and packer)."""
    keys = jax.random.split(key, num_blocks + 1)
    w_in, b_in = _linear_init(keys[0], width, input_size)
    blocks = []
    for i in range(num_blocks):
        ks = jax.random.split(keys[i + 1], 5)
        w0, b0 = _linear_init(ks[0], width, 3 * width)
        w1, b1 = _linear_init(ks[1], width, width)
        w2, b2 = _linear_init(ks[2], width, width)
        a_re, _ = _linear_init(ks[3], width, width)
        a_im, _ = _linear_init(ks[4], width, width)
        blocks.append(dict(
            t=jnp.full((width,), 1e-4, jnp.float32),   # nn.init.constant_(0.0001)
            A_re=a_re, A_im=a_im,
            w0=w0, b0=b0, w1=w1, b1=b1, w2=w2, b2=b2,
        ))
    return dict(w_in=w_in, b_in=b_in, blocks=blocks)


def _pad2(a, nrows, ncols):
    return jnp.pad(a, ((0, nrows - a.shape[0]), (0, ncols - a.shape[1])))


def _pack_encoder(enc, width, wp):
    """Pre-transpose / pre-pad / stack all block weights ONCE (kernel layout)."""
    W = width
    out = {
        "w_in": _pad2(enc["w_in"].T, enc["w_in"].shape[1], wp),   # (din, Wp)
        "b_in": _pad2(enc["b_in"].reshape(1, -1), 1, wp),         # (1, Wp)
    }
    fields = {k: [] for k in ["t", "pdw_re", "pdw_im", "w0a", "w0b", "w0c",
                              "b0", "w1", "b1", "w2", "b2"]}
    for bp in enc["blocks"]:
        are_t = _pad2(bp["A_re"].T, wp, wp)
        aim_t = _pad2(bp["A_im"].T, wp, wp)
        fields["t"].append(_pad2(bp["t"].reshape(1, -1), 1, wp))
        fields["pdw_re"].append(jnp.concatenate([are_t, aim_t], axis=1))   # (Wp,2Wp)
        fields["pdw_im"].append(jnp.concatenate([-aim_t, are_t], axis=1))  # (Wp,2Wp)
        w0 = bp["w0"]
        fields["w0a"].append(_pad2(w0[:, 0:W].T, wp, wp))
        fields["w0b"].append(_pad2(w0[:, W:2 * W].T, wp, wp))
        fields["w0c"].append(_pad2(w0[:, 2 * W:3 * W].T, wp, wp))
        fields["b0"].append(_pad2(bp["b0"].reshape(1, -1), 1, wp))
        fields["w1"].append(_pad2(bp["w1"].T, wp, wp))
        fields["b1"].append(_pad2(bp["b1"].reshape(1, -1), 1, wp))
        fields["w2"].append(_pad2(bp["w2"].T, wp, wp))
        fields["b2"].append(_pad2(bp["b2"].reshape(1, -1), 1, wp))
    out.update({k: jnp.stack(v, axis=0) for k, v in fields.items()})
    return out


def pack_params(params, width, wp):
    e1 = _pack_encoder(params["encoder1"], width, wp)
    e2 = _pack_encoder(params["encoder2"], width, wp)
    packed = {"enc_" + k: jnp.stack([e1[k], e2[k]], axis=0) for k in e1}
    packed["fc1_w"] = params["fc1_w"].T
    packed["fc1_b"] = params["fc1_b"].reshape(1, -1)
    packed["fc2_w"] = params["fc2_w"].T
    packed["fc2_b"] = params["fc2_b"].reshape(1, -1)
    packed["fc3_w"] = params["fc3_w"].T
    packed["fc3_b"] = params["fc3_b"].reshape(1, -1)
    return packed


def synth_operators(key, V, K):
    # TODO(synk): geometry.compute_operators (point-cloud Laplacian
    # eigendecomposition) has no clean Pallas equivalent; deterministic
    # stand-in operators are synthesized instead.
    k1, k2, k3 = jax.random.split(key, 3)
    mass = jax.random.uniform(k1, (V,), jnp.float32, 0.5, 1.5)
    evals = jnp.linspace(0.0, 5.0, K).astype(jnp.float32)
    evecs = jax.random.normal(k2, (V, K), jnp.float32) / jnp.sqrt(jnp.float32(V))
    grad = jax.random.normal(k3, (V, K, 2), jnp.float32) / jnp.sqrt(jnp.float32(K))
    return mass, evals, evecs, grad[..., 0], grad[..., 1]


# ------------------------- pure-JAX reference -------------------------

def encoder_forward_ref(enc, verts, mass, evals, evecs, grad_re, grad_im):
    x = normalize_positions(verts) @ enc["w_in"].T + enc["b_in"]
    for bp in enc["blocks"]:
        x_spec = evecs.T @ (mass[:, None] * x)
        coefs = jnp.exp(-evals[:, None] * jnp.abs(bp["t"])[None, :])
        x_spec = coefs * x_spec
        x_lap = evecs @ x_spec
        xg_re = grad_re @ x_spec
        xg_im = grad_im @ x_spec
        b_re = xg_re @ bp["A_re"].T - xg_im @ bp["A_im"].T
        b_im = xg_im @ bp["A_re"].T + xg_re @ bp["A_im"].T
        dots = jnp.tanh(xg_re * b_re + xg_im * b_im)
        comb = jnp.concatenate([x, x_lap, dots], axis=-1)
        h = jnp.maximum(comb @ bp["w0"].T + bp["b0"], 0.0)
        h = jnp.maximum(h @ bp["w1"].T + bp["b1"], 0.0)
        h = h @ bp["w2"].T + bp["b2"]
        x = h + x
    return x


def head_forward_ref(params, x_head):
    h = x_head @ params["fc1_w"].T + params["fc1_b"]
    h = h @ params["fc2_w"].T + params["fc2_b"]
    return h @ params["fc3_w"].T + params["fc3_b"]


# ------------------------- main -------------------------

if __name__ == "__main__":
    key = jax.random.PRNGKey(0)
    kp, kd1, kd2, kops, kh = jax.random.split(key, 5)

    V = 64            # vertices per protein
    K = 16            # eigenvectors (small stand-in for num_eigenvecs=128)
    WIDTH = 32        # DiffusionNet channel width
    WIDTH_PAD = 128   # lane-dense padded width used inside the kernels
    NUM_BLOCKS = 4

    p1 = jax.random.normal(kd1, (V, 5), jnp.float32)
    p2 = jax.random.normal(kd2, (V, 5), jnp.float32)

    params = dict(
        encoder1=init_encoder(jax.random.fold_in(kp, 1), input_size=3,
                              width=WIDTH, num_blocks=NUM_BLOCKS),
        encoder2=init_encoder(jax.random.fold_in(kp, 2), input_size=3,
                              width=WIDTH, num_blocks=NUM_BLOCKS),
    )
    fc1_w, fc1_b = _linear_init(jax.random.fold_in(kh, 1), 16, 1024)
    fc2_w, fc2_b = _linear_init(jax.random.fold_in(kh, 2), 4, 16)
    fc3_w, fc3_b = _linear_init(jax.random.fold_in(kh, 3), 2, 4)
    params.update(fc1_w=fc1_w, fc1_b=fc1_b, fc2_w=fc2_w, fc2_b=fc2_b,
                  fc3_w=fc3_w, fc3_b=fc3_b)

    packed = pack_params(params, WIDTH, WIDTH_PAD)   # one-time weight packing

    ops1 = synth_operators(jax.random.fold_in(kops, 1), V, K)
    ops2 = synth_operators(jax.random.fold_in(kops, 2), V, K)

    # TODO(synk): the original forward feeds np.random.rand() (a scalar) into
    # nn.Linear(1024, 16), which is broken; use a deterministic (1, 1024) vector.
    x_head = jax.random.uniform(jax.random.fold_in(kops, 3), (1, 1024), jnp.float32)

    x0, x1, x2 = diffusionnet_ppi_forward(packed, p1, p2, ops1, ops2, x_head,
                                          width=WIDTH)
    jax.block_until_ready((x0, x1, x2))

    # Correctness check against a pure-JAX reference of the module semantics.
    x1_ref = encoder_forward_ref(params["encoder1"], p1[:, 0:3], *ops1)
    x2_ref = encoder_forward_ref(params["encoder2"], p2[:, 0:3], *ops2)
    x0_ref = head_forward_ref(params, x_head)

    assert x0.shape == (1, 2)
    assert x1.shape == (V, WIDTH) and x2.shape == (V, WIDTH)
    np.testing.assert_allclose(np.asarray(x1), np.asarray(x1_ref), rtol=2e-3, atol=2e-3)
    np.testing.assert_allclose(np.asarray(x2), np.asarray(x2_ref), rtol=2e-3, atol=2e-3)
    np.testing.assert_allclose(np.asarray(x0), np.asarray(x0_ref), rtol=2e-3, atol=2e-3)
    print("KERNEL_OK")
</pallas_src>

<mosaic_0001>
module attributes {stable_mosaic.version = 11 : i64} {
  func.func @head_kernel(%arg0: memref<1x1024xf32, #tpu.memory_space<vmem>>, %arg1: memref<1024x16xf32, #tpu.memory_space<vmem>>, %arg2: memref<1x16xf32, #tpu.memory_space<vmem>>, %arg3: memref<16x4xf32, #tpu.memory_space<vmem>>, %arg4: memref<1x4xf32, #tpu.memory_space<vmem>>, %arg5: memref<4x2xf32, #tpu.memory_space<vmem>>, %arg6: memref<1x2xf32, #tpu.memory_space<vmem>>, %arg7: memref<1x2xf32, #tpu.memory_space<vmem>>) attributes {dimension_semantics = [], scalar_prefetch = 0 : i64, scratch_operands = 0 : i64, tpu.core_type = #tpu.core_type<tc>} {
    %c0 = arith.constant 0 : index
    %c0_0 = arith.constant 0 : index
    %0 = vector.load %arg0[%c0, %c0_0] : memref<1x1024xf32, #tpu.memory_space<vmem>>, vector<1x1024xf32>
    %c0_1 = arith.constant 0 : index
    %c0_2 = arith.constant 0 : index
    %1 = vector.load %arg1[%c0_1, %c0_2] : memref<1024x16xf32, #tpu.memory_space<vmem>>, vector<1024x16xf32>
    %cst = arith.constant dense<0.000000e+00> : vector<1x16xf32>
    %2 = tpu.matmul %0, %1, %cst {dimension_numbers = #tpu.dot_dimension_numbers<[1], [0], [0], [1], [0, 0, 1, 1], [], []>} : vector<1x1024xf32>, vector<1024x16xf32>, vector<1x16xf32> -> vector<1x16xf32>
    %c0_3 = arith.constant 0 : index
    %c0_4 = arith.constant 0 : index
    %3 = vector.load %arg2[%c0_3, %c0_4] : memref<1x16xf32, #tpu.memory_space<vmem>>, vector<1x16xf32>
    %4 = arith.addf %2, %3 : vector<1x16xf32>
    %c0_5 = arith.constant 0 : index
    %c0_6 = arith.constant 0 : index
    %5 = vector.load %arg3[%c0_5, %c0_6] : memref<16x4xf32, #tpu.memory_space<vmem>>, vector<16x4xf32>
    %cst_7 = arith.constant dense<0.000000e+00> : vector<1x4xf32>
    %6 = tpu.matmul %4, %5, %cst_7 {dimension_numbers = #tpu.dot_dimension_numbers<[1], [0], [0], [1], [0, 0, 1, 1], [], []>} : vector<1x16xf32>, vector<16x4xf32>, vector<1x4xf32> -> vector<1x4xf32>
    %c0_8 = arith.constant 0 : index
    %c0_9 = arith.constant 0 : index
    %7 = vector.load %arg4[%c0_8, %c0_9] : memref<1x4xf32, #tpu.memory_space<vmem>>, vector<1x4xf32>
    %8 = arith.addf %6, %7 : vector<1x4xf32>
    %c0_10 = arith.constant 0 : index
    %c0_11 = arith.constant 0 : index
    %9 = vector.load %arg5[%c0_10, %c0_11] : memref<4x2xf32, #tpu.memory_space<vmem>>, vector<4x2xf32>
    %cst_12 = arith.constant dense<0.000000e+00> : vector<1x2xf32>
    %10 = tpu.matmul %8, %9, %cst_12 {dimension_numbers = #tpu.dot_dimension_numbers<[1], [0], [0], [1], [0, 0, 1, 1], [], []>} : vector<1x4xf32>, vector<4x2xf32>, vector<1x2xf32> -> vector<1x2xf32>
    %c0_13 = arith.constant 0 : index
    %c0_14 = arith.constant 0 : index
    %11 = vector.load %arg6[%c0_13, %c0_14] : memref<1x2xf32, #tpu.memory_space<vmem>>, vector<1x2xf32>
    %12 = arith.addf %10, %11 : vector<1x2xf32>
    %c0_15 = arith.constant 0 : index
    %c0_16 = arith.constant 0 : index
    %13 = vector.load %arg7[%c0_15, %c0_16] : memref<1x2xf32, #tpu.memory_space<vmem>>, vector<1x2xf32>
    tpu.vector_store %arg7[%c0_15, %c0_16], %12 {strides = array<i32>} : memref<1x2xf32, #tpu.memory_space<vmem>>, vector<1x2xf32>,
    return
  }
}

module attributes {stable_mosaic.version = 11 : i64} {
  func.func @encoder_blocks_kernel(%arg0: i32, %arg1: i32, %arg2: memref<1x64x128xf32, #tpu.memory_space<vmem>>, %arg3: memref<1x64x1xf32, #tpu.memory_space<vmem>>, %arg4: memref<1x16x1xf32, #tpu.memory_space<vmem>>, %arg5: memref<1x192x16xf32, #tpu.memory_space<vmem>>, %arg6: memref<1x1x1x128xf32, #tpu.memory_space<vmem>>, %arg7: memref<1x1x128x256xf32, #tpu.memory_space<vmem>>, %arg8: memref<1x1x128x256xf32, #tpu.memory_space<vmem>>, %arg9: memref<1x1x128x128xf32, #tpu.memory_space<vmem>>, %arg10: memref<1x1x128x128xf32, #tpu.memory_space<vmem>>, %arg11: memref<1x1x128x128xf32, #tpu.memory_space<vmem>>, %arg12: memref<1x1x1x128xf32, #tpu.memory_space<vmem>>, %arg13: memref<1x1x128x128xf32, #tpu.memory_space<vmem>>, %arg14: memref<1x1x1x128xf32, #tpu.memory_space<vmem>>, %arg15: memref<1x1x128x128xf32, #tpu.memory_space<vmem>>, %arg16: memref<1x1x1x128xf32, #tpu.memory_space<vmem>>, %arg17: memref<1x64x128xf32, #tpu.memory_space<vmem>>, %arg18: memref<64x128xf32, #tpu.memory_space<vmem>>) attributes {dimension_semantics = [#tpu.dimension_semantics<parallel>, #tpu.dimension_semantics<arbitrary>], iteration_bounds = array<i64: 2, 4>, scalar_prefetch = 0 : i64, scratch_operands = 1 : i64, tpu.core_type = #tpu.core_type<tc>, window_params = [{transform_indices = @transform_0, window_bounds = array<i64: 1, 64, 128>}, {transform_indices = @transform_1, window_bounds = array<i64: 1, 64, 1>}, {transform_indices = @transform_2, window_bounds = array<i64: 1, 16, 1>}, {transform_indices = @transform_3, window_bounds = array<i64: 1, 192, 16>}, {transform_indices = @transform_4, window_bounds = array<i64: 1, 1, 1, 128>}, {transform_indices = @transform_5, window_bounds = array<i64: 1, 1, 128, 256>}, {transform_indices = @transform_6, window_bounds = array<i64: 1, 1, 128, 256>}, {transform_indices = @transform_7, window_bounds = array<i64: 1, 1, 128, 128>}, {transform_indices = @transform_8, window_bounds = array<i64: 1, 1, 128, 128>}, {transform_indices = @transform_9, window_bounds = array<i64: 1, 1, 128, 128>}, {transform_indices = @transform_10, window_bounds = array<i64: 1, 1, 1, 128>}, {transform_indices = @transform_11, window_bounds = array<i64: 1, 1, 128, 128>}, {transform_indices = @transform_12, window_bounds = array<i64: 1, 1, 1, 128>}, {transform_indices = @transform_13, window_bounds = array<i64: 1, 1, 128, 128>}, {transform_indices = @transform_14, window_bounds = array<i64: 1, 1, 1, 128>}, {transform_indices = @transform_15, window_bounds = array<i64: 1, 64, 128>}]} {
    %c0_i32 = arith.constant 0 : i32
    %0 = arith.cmpi eq, %arg1, %c0_i32 : i32
    %1 = arith.extui %0 : i1 to i32
    %c0_i32_0 = arith.constant 0 : i32
    %2 = arith.cmpi ne, %1, %c0_i32_0 : i32
    scf.if %2 {
      %c0_72 = arith.constant 0 : index
      %c0_73 = arith.constant 0 : index
      %c0_74 = arith.constant 0 : index
      %80 = vector.load %arg2[%c0_72, %c0_73, %c0_74] : memref<1x64x128xf32, #tpu.memory_space<vmem>>, vector<1x64x128xf32>
      %81 = vector.shape_cast %80 : vector<1x64x128xf32> to vector<64x128xf32>
      %c0_75 = arith.constant 0 : index
      %c0_76 = arith.constant 0 : index
      %82 = vector.load %arg18[%c0_75, %c0_76] : memref<64x128xf32, #tpu.memory_space<vmem>>, vector<64x128xf32>
      tpu.vector_store %arg18[%c0_75, %c0_76], %81 {strides = array<i32>} : memref<64x128xf32, #tpu.memory_space<vmem>>, vector<64x128xf32>,
    } else {
    }
    %c0 = arith.constant 0 : index
    %c0_1 = arith.constant 0 : index
    %3 = vector.load %arg18[%c0, %c0_1] : memref<64x128xf32, #tpu.memory_space<vmem>>, vector<64x128xf32>
    %c0_2 = arith.constant 0 : index
    %c0_3 = arith.constant 0 : index
    %c0_4 = arith.constant 0 : index
    %4 = vector.load %arg5[%c0_2, %c0_3, %c0_4] : memref<1x192x16xf32, #tpu.memory_space<vmem>>, vector<1x64x16xf32>
    %5 = vector.shape_cast %4 : vector<1x64x16xf32> to vector<64x16xf32>
    %c0_5 = arith.constant 0 : index
    %c0_6 = arith.constant 0 : index
    %c0_7 = arith.constant 0 : index
    %6 = vector.load %arg3[%c0_5, %c0_6, %c0_7] : memref<1x64x1xf32, #tpu.memory_space<vmem>>, vector<1x64x1xf32>
    %7 = vector.shape_cast %6 : vector<1x64x1xf32> to vector<64x1xf32>
    %8 = vector.broadcast %7 : vector<64x1xf32> to vector<64x128xf32>
    %9 = arith.mulf %8, %3 : vector<64x128xf32>
    %cst = arith.constant dense<0.000000e+00> : vector<16x128xf32>
    %10 = tpu.matmul %5, %9, %cst {dimension_numbers = #tpu.dot_dimension_numbers<[0], [0], [1], [1], [0, 1, 1, 1], [], []>} : vector<64x16xf32>, vector<64x128xf32>, vector<16x128xf32> -> vector<16x128xf32>
    %c0_8 = arith.constant 0 : index
    %c0_9 = arith.constant 0 : index
    %c0_10 = arith.constant 0 : index
    %11 = vector.load %arg4[%c0_8, %c0_9, %c0_10] : memref<1x16x1xf32, #tpu.memory_space<vmem>>, vector<1x16x1xf32>
    %12 = vector.shape_cast %11 : vector<1x16x1xf32> to vector<16x1xf32>
    %cst_11 = arith.constant 0.000000e+00 : f32
    %13 = vector.broadcast %cst_11 : f32 to vector<16x1xf32>
    %14 = arith.subf %13, %12 : vector<16x1xf32>
    %c0_12 = arith.constant 0 : index
    %c0_13 = arith.constant 0 : index
    %c0_14 = arith.constant 0 : index
    %c0_15 = arith.constant 0 : index
    %15 = vector.load %arg6[%c0_12, %c0_13, %c0_14, %c0_15] : memref<1x1x1x128xf32, #tpu.memory_space<vmem>>, vector<1x1x1x128xf32>
    %16 = vector.shape_cast %15 : vector<1x1x1x128xf32> to vector<1x128xf32>
    %17 = math.absf %16 : vector<1x128xf32>
    %18 = vector.broadcast %14 : vector<16x1xf32> to vector<16x128xf32>
    %19 = vector.broadcast %17 : vector<1x128xf32> to vector<16x128xf32>
    %20 = arith.mulf %18, %19 : vector<16x128xf32>
    %21 = math.exp %20 : vector<16x128xf32>
    %22 = arith.mulf %21, %10 : vector<16x128xf32>
    %c0_16 = arith.constant 0 : index
    %c0_17 = arith.constant 0 : index
    %c0_18 = arith.constant 0 : index
    %23 = vector.load %arg5[%c0_16, %c0_17, %c0_18] : memref<1x192x16xf32, #tpu.memory_space<vmem>>, vector<1x192x16xf32>
    %24 = vector.shape_cast %23 : vector<1x192x16xf32> to vector<192x16xf32>
    %cst_19 = arith.constant dense<0.000000e+00> : vector<192x128xf32>
    %25 = tpu.matmul %24, %22, %cst_19 {dimension_numbers = #tpu.dot_dimension_numbers<[1], [0], [0], [1], [0, 0, 1, 1], [], []>} : vector<192x16xf32>, vector<16x128xf32>, vector<192x128xf32> -> vector<192x128xf32>
    %26 = vector.extract_strided_slice %25 {offsets = [0, 0], sizes = [64, 128], strides = [1, 1]} : vector<192x128xf32> to vector<64x128xf32>
    %27 = vector.extract_strided_slice %25 {offsets = [64, 0], sizes = [64, 128], strides = [1, 1]} : vector<192x128xf32> to vector<64x128xf32>
    %28 = vector.extract_strided_slice %25 {offsets = [128, 0], sizes = [64, 128], strides = [1, 1]} : vector<192x128xf32> to vector<64x128xf32>
    %c0_20 = arith.constant 0 : index
    %c0_21 = arith.constant 0 : index
    %c0_22 = arith.constant 0 : index
    %c0_23 = arith.constant 0 : index
    %29 = vector.load %arg7[%c0_20, %c0_21, %c0_22, %c0_23] : memref<1x1x128x256xf32, #tpu.memory_space<vmem>>, vector<1x1x128x256xf32>
    %30 = vector.shape_cast %29 : vector<1x1x128x256xf32> to vector<128x256xf32>
    %cst_24 = arith.constant dense<0.000000e+00> : vector<64x256xf32>
    %31 = tpu.matmul %27, %30, %cst_24 {dimension_numbers = #tpu.dot_dimension_numbers<[1], [0], [0], [1], [0, 0, 1, 1], [], []>} : vector<64x128xf32>, vector<128x256xf32>, vector<64x256xf32> -> vector<64x256xf32>
    %c0_25 = arith.constant 0 : index
    %c0_26 = arith.constant 0 : index
    %c0_27 = arith.constant 0 : index
    %c0_28 = arith.constant 0 : index
    %32 = vector.load %arg8[%c0_25, %c0_26, %c0_27, %c0_28] : memref<1x1x128x256xf32, #tpu.memory_space<vmem>>, vector<1x1x128x256xf32>
    %33 = vector.shape_cast %32 : vector<1x1x128x256xf32> to vector<128x256xf32>
    %cst_29 = arith.constant dense<0.000000e+00> : vector<64x256xf32>
    %34 = tpu.matmul %28, %33, %cst_29 {dimension_numbers = #tpu.dot_dimension_numbers<[1], [0], [0], [1], [0, 0, 1, 1], [], []>} : vector<64x128xf32>, vector<128x256xf32>, vector<64x256xf32> -> vector<64x256xf32>
    %35 = arith.addf %31, %34 : vector<64x256xf32>
    %36 = vector.extract_strided_slice %35 {offsets = [0, 0], sizes = [64, 128], strides = [1, 1]} : vector<64x256xf32> to vector<64x128xf32>
    %37 = arith.mulf %27, %36 : vector<64x128xf32>
    %38 = vector.extract_strided_slice %35 {offsets = [0, 128], sizes = [64, 128], strides = [1, 1]} : vector<64x256xf32> to vector<64x128xf32>
    %39 = arith.mulf %28, %38 : vector<64x128xf32>
    %40 = arith.addf %37, %39 : vector<64x128xf32>
    %41 = math.tanh %40 : vector<64x128xf32>
    %c0_30 = arith.constant 0 : index
    %c0_31 = arith.constant 0 : index
    %c0_32 = arith.constant 0 : index
    %c0_33 = arith.constant 0 : index
    %42 = vector.load %arg9[%c0_30, %c0_31, %c0_32, %c0_33] : memref<1x1x128x128xf32, #tpu.memory_space<vmem>>, vector<1x1x128x128xf32>
    %43 = vector.shape_cast %42 : vector<1x1x128x128xf32> to vector<128x128xf32>
    %cst_34 = arith.constant dense<0.000000e+00> : vector<64x128xf32>
    %44 = tpu.matmul %3, %43, %cst_34 {dimension_numbers = #tpu.dot_dimension_numbers<[1], [0], [0], [1], [0, 0, 1, 1], [], []>} : vector<64x128xf32>, vector<128x128xf32>, vector<64x128xf32> -> vector<64x128xf32>
    %c0_35 = arith.constant 0 : index
    %c0_36 = arith.constant 0 : index
    %c0_37 = arith.constant 0 : index
    %c0_38 = arith.constant 0 : index
    %45 = vector.load %arg10[%c0_35, %c0_36, %c0_37, %c0_38] : memref<1x1x128x128xf32, #tpu.memory_space<vmem>>, vector<1x1x128x128xf32>
    %46 = vector.shape_cast %45 : vector<1x1x128x128xf32> to vector<128x128xf32>
    %cst_39 = arith.constant dense<0.000000e+00> : vector<64x128xf32>
    %47 = tpu.matmul %26, %46, %cst_39 {dimension_numbers = #tpu.dot_dimension_numbers<[1], [0], [0], [1], [0, 0, 1, 1], [], []>} : vector<64x128xf32>, vector<128x128xf32>, vector<64x128xf32> -> vector<64x128xf32>
    %48 = arith.addf %44, %47 : vector<64x128xf32>
    %c0_40 = arith.constant 0 : index
    %c0_41 = arith.constant 0 : index
    %c0_42 = arith.constant 0 : index
    %c0_43 = arith.constant 0 : index
    %49 = vector.load %arg11[%c0_40, %c0_41, %c0_42, %c0_43] : memref<1x1x128x128xf32, #tpu.memory_space<vmem>>, vector<1x1x128x128xf32>
    %50 = vector.shape_cast %49 : vector<1x1x128x128xf32> to vector<128x128xf32>
    %cst_44 = arith.constant dense<0.000000e+00> : vector<64x128xf32>
    %51 = tpu.matmul %41, %50, %cst_44 {dimension_numbers = #tpu.dot_dimension_numbers<[1], [0], [0], [1], [0, 0, 1, 1], [], []>} : vector<64x128xf32>, vector<128x128xf32>, vector<64x128xf32> -> vector<64x128xf32>
    %52 = arith.addf %48, %51 : vector<64x128xf32>
    %c0_45 = arith.constant 0 : index
    %c0_46 = arith.constant 0 : index
    %c0_47 = arith.constant 0 : index
    %c0_48 = arith.constant 0 : index
    %53 = vector.load %arg12[%c0_45, %c0_46, %c0_47, %c0_48] : memref<1x1x1x128xf32, #tpu.memory_space<vmem>>, vector<1x1x1x128xf32>
    %54 = vector.shape_cast %53 : vector<1x1x1x128xf32> to vector<1x128xf32>
    %55 = vector.broadcast %54 : vector<1x128xf32> to vector<64x128xf32>
    %56 = arith.addf %52, %55 : vector<64x128xf32>
    %cst_49 = arith.constant 0.000000e+00 : f32
    %57 = vector.broadcast %cst_49 : f32 to vector<64x128xf32>
    %58 = arith.maximumf %56, %57 : vector<64x128xf32>
    %c0_50 = arith.constant 0 : index
    %c0_51 = arith.constant 0 : index
    %c0_52 = arith.constant 0 : index
    %c0_53 = arith.constant 0 : index
    %59 = vector.load %arg13[%c0_50, %c0_51, %c0_52, %c0_53] : memref<1x1x128x128xf32, #tpu.memory_space<vmem>>, vector<1x1x128x128xf32>
    %60 = vector.shape_cast %59 : vector<1x1x128x128xf32> to vector<128x128xf32>
    %cst_54 = arith.constant dense<0.000000e+00> : vector<64x128xf32>
    %61 = tpu.matmul %58, %60, %cst_54 {dimension_numbers = #tpu.dot_dimension_numbers<[1], [0], [0], [1], [0, 0, 1, 1], [], []>} : vector<64x128xf32>, vector<128x128xf32>, vector<64x128xf32> -> vector<64x128xf32>
    %c0_55 = arith.constant 0 : index
    %c0_56 = arith.constant 0 : index
    %c0_57 = arith.constant 0 : index
    %c0_58 = arith.constant 0 : index
    %62 = vector.load %arg14[%c0_55, %c0_56, %c0_57, %c0_58] : memref<1x1x1x128xf32, #tpu.memory_space<vmem>>, vector<1x1x1x128xf32>
    %63 = vector.shape_cast %62 : vector<1x1x1x128xf32> to vector<1x128xf32>
    %64 = vector.broadcast %63 : vector<1x128xf32> to vector<64x128xf32>
    %65 = arith.addf %61, %64 : vector<64x128xf32>
    %cst_59 = arith.constant 0.000000e+00 : f32
    %66 = vector.broadcast %cst_59 : f32 to vector<64x128xf32>
    %67 = arith.maximumf %65, %66 : vector<64x128xf32>
    %c0_60 = arith.constant 0 : index
    %c0_61 = arith.constant 0 : index
    %c0_62 = arith.constant 0 : index
    %c0_63 = arith.constant 0 : index
    %68 = vector.load %arg15[%c0_60, %c0_61, %c0_62, %c0_63] : memref<1x1x128x128xf32, #tpu.memory_space<vmem>>, vector<1x1x128x128xf32>
    %69 = vector.shape_cast %68 : vector<1x1x128x128xf32> to vector<128x128xf32>
    %cst_64 = arith.constant dense<0.000000e+00> : vector<64x128xf32>
    %70 = tpu.matmul %67, %69, %cst_64 {dimension_numbers = #tpu.dot_dimension_numbers<[1], [0], [0], [1], [0, 0, 1, 1], [], []>} : vector<64x128xf32>, vector<128x128xf32>, vector<64x128xf32> -> vector<64x128xf32>
    %c0_65 = arith.constant 0 : index
    %c0_66 = arith.constant 0 : index
    %c0_67 = arith.constant 0 : index
    %c0_68 = arith.constant 0 : index
    %71 = vector.load %arg16[%c0_65, %c0_66, %c0_67, %c0_68] : memref<1x1x1x128xf32, #tpu.memory_space<vmem>>, vector<1x1x1x128xf32>
    %72 = vector.shape_cast %71 : vector<1x1x1x128xf32> to vector<1x128xf32>
    %73 = vector.broadcast %72 : vector<1x128xf32> to vector<64x128xf32>
    %74 = arith.addf %70, %73 : vector<64x128xf32>
    %75 = arith.addf %74, %3 : vector<64x128xf32>
    %c0_69 = arith.constant 0 : index
    %c0_70 = arith.constant 0 : index
    %76 = vector.load %arg18[%c0_69, %c0_70] : memref<64x128xf32, #tpu.memory_space<vmem>>, vector<64x128xf32>
    tpu.vector_store %arg18[%c0_69, %c0_70], %75 {strides = array<i32>} : memref<64x128xf32, #tpu.memory_space<vmem>>, vector<64x128xf32>,
    %c3_i32 = arith.constant 3 : i32
    %77 = arith.cmpi eq, %arg1, %c3_i32 : i32
    %78 = arith.extui %77 : i1 to i32
    %c0_i32_71 = arith.constant 0 : i32
    %79 = arith.cmpi ne, %78, %c0_i32_71 : i32
    scf.if %79 {
      %c0_72 = arith.constant 0 : index
      %c0_73 = arith.constant 0 : index
      %c0_74 = arith.constant 0 : index
      %80 = vector.load %arg17[%c0_72, %c0_73, %c0_74] : memref<1x64x128xf32, #tpu.memory_space<vmem>>, vector<1x64x128xf32>
      %81 = vector.shape_cast %80 : vector<1x64x128xf32> to vector<64x128xf32>
      %82 = vector.shape_cast %75 : vector<64x128xf32> to vector<1x64x128xf32>
      tpu.vector_store %arg17[%c0_72, %c0_73, %c0_74], %82 {strides = array<i32>} : memref<1x64x128xf32, #tpu.memory_space<vmem>>, vector<1x64x128xf32>,
    } else {
    }
    return
  }
  func.func @transform_0(%arg0: i32, %arg1: i32) -> (i32, i32, i32) {
    %c0_i32 = arith.constant 0 : i32
    %c0_i32_0 = arith.constant 0 : i32
    %c0_i32_1 = arith.constant 0 : i32
    return %arg0, %c0_i32, %c0_i32_0 : i32, i32, i32
  }
  func.func @transform_1(%arg0: i32, %arg1: i32) -> (i32, i32, i32) {
    %c0_i32 = arith.constant 0 : i32
    %c0_i32_0 = arith.constant 0 : i32
    %c0_i32_1 = arith.constant 0 : i32
    return %arg0, %c0_i32, %c0_i32_0 : i32, i32, i32
  }
  func.func @transform_2(%arg0: i32, %arg1: i32) -> (i32, i32, i32) {
    %c0_i32 = arith.constant 0 : i32
    %c0_i32_0 = arith.constant 0 : i32
    %c0_i32_1 = arith.constant 0 : i32
    return %arg0, %c0_i32, %c0_i32_0 : i32, i32, i32
  }
  func.func @transform_3(%arg0: i32, %arg1: i32) -> (i32, i32, i32) {
    %c0_i32 = arith.constant 0 : i32
    %c0_i32_0 = arith.constant 0 : i32
    %c0_i32_1 = arith.constant 0 : i32
    return %arg0, %c0_i32, %c0_i32_0 : i32, i32, i32
  }
  func.func @transform_4(%arg0: i32, %arg1: i32) -> (i32, i32, i32, i32) {
    %c0_i32 = arith.constant 0 : i32
    %c0_i32_0 = arith.constant 0 : i32
    %c0_i32_1 = arith.constant 0 : i32
    return %arg0, %arg1, %c0_i32, %c0_i32_0 : i32, i32, i32, i32
  }
  func.func @transform_5(%arg0: i32, %arg1: i32) -> (i32, i32, i32, i32) {
    %c0_i32 = arith.constant 0 : i32
    %c0_i32_0 = arith.constant 0 : i32
    %c0_i32_1 = arith.constant 0 : i32
    return %arg0, %arg1, %c0_i32, %c0_i32_0 : i32, i32, i32, i32
  }
  func.func @transform_6(%arg0: i32, %arg1: i32) -> (i32, i32, i32, i32) {
    %c0_i32 = arith.constant 0 : i32
    %c0_i32_0 = arith.constant 0 : i32
    %c0_i32_1 = arith.constant 0 : i32
    return %arg0, %arg1, %c0_i32, %c0_i32_0 : i32, i32, i32, i32
  }
  func.func @transform_7(%arg0: i32, %arg1: i32) -> (i32, i32, i32, i32) {
    %c0_i32 = arith.constant 0 : i32
    %c0_i32_0 = arith.constant 0 : i32
    %c0_i32_1 = arith.constant 0 : i32
    return %arg0, %arg1, %c0_i32, %c0_i32_0 : i32, i32, i32, i32
  }
  func.func @transform_8(%arg0: i32, %arg1: i32) -> (i32, i32, i32, i32) {
    %c0_i32 = arith.constant 0 : i32
    %c0_i32_0 = arith.constant 0 : i32
    %c0_i32_1 = arith.constant 0 : i32
    return %arg0, %arg1, %c0_i32, %c0_i32_0 : i32, i32, i32, i32
  }
  func.func @transform_9(%arg0: i32, %arg1: i32) -> (i32, i32, i32, i32) {
    %c0_i32 = arith.constant 0 : i32
    %c0_i32_0 = arith.constant 0 : i32
    %c0_i32_1 = arith.constant 0 : i32
    return %arg0, %arg1, %c0_i32, %c0_i32_0 : i32, i32, i32, i32
  }
  func.func @transform_10(%arg0: i32, %arg1: i32) -> (i32, i32, i32, i32) {
    %c0_i32 = arith.constant 0 : i32
    %c0_i32_0 = arith.constant 0 : i32
    %c0_i32_1 = arith.constant 0 : i32
    return %arg0, %arg1, %c0_i32, %c0_i32_0 : i32, i32, i32, i32
  }
  func.func @transform_11(%arg0: i32, %arg1: i32) -> (i32, i32, i32, i32) {
    %c0_i32 = arith.constant 0 : i32
    %c0_i32_0 = arith.constant 0 : i32
    %c0_i32_1 = arith.constant 0 : i32
    return %arg0, %arg1, %c0_i32, %c0_i32_0 : i32, i32, i32, i32
  }
  func.func @transform_12(%arg0: i32, %arg1: i32) -> (i32, i32, i32, i32) {
    %c0_i32 = arith.constant 0 : i32
    %c0_i32_0 = arith.constant 0 : i32
    %c0_i32_1 = arith.constant 0 : i32
    return %arg0, %arg1, %c0_i32, %c0_i32_0 : i32, i32, i32, i32
  }
  func.func @transform_13(%arg0: i32, %arg1: i32) -> (i32, i32, i32, i32) {
    %c0_i32 = arith.constant 0 : i32
    %c0_i32_0 = arith.constant 0 : i32
    %c0_i32_1 = arith.constant 0 : i32
    return %arg0, %arg1, %c0_i32, %c0_i32_0 : i32, i32, i32, i32
  }
  func.func @transform_14(%arg0: i32, %arg1: i32) -> (i32, i32, i32, i32) {
    %c0_i32 = arith.constant 0 : i32
    %c0_i32_0 = arith.constant 0 : i32
    %c0_i32_1 = arith.constant 0 : i32
    return %arg0, %arg1, %c0_i32, %c0_i32_0 : i32, i32, i32, i32
  }
  func.func @transform_15(%arg0: i32, %arg1: i32) -> (i32, i32, i32) {
    %c0_i32 = arith.constant 0 : i32
    %c0_i32_0 = arith.constant 0 : i32
    %c0_i32_1 = arith.constant 0 : i32
    return %arg0, %c0_i32, %c0_i32_0 : i32, i32, i32
  }
}

</mosaic_0001>

<bundles_post_ra>
// kernel: diffusionnet_ppi_forward.3
= control target key start
LH: loop header
LB: loop body
LE: loop exit
PB: predicated region body
PF: predicated region fallthrough
CT: control target
= control target key end

     0   :  { %v158_v47 = vlaneseq  ;;  %s1451_s0 = inlined_call_operand.vmem [shape: f32[1,1024], index: 0, kind: input, shape index: {}]   ;;  %s1452_s1 = inlined_call_operand.vmem [shape: f32[1024,16], index: 1, kind: input, shape index: {}]   ;;  %s1453_s2 = inlined_call_operand.vmem [shape: f32[1,16], index: 2, kind: input, shape index: {}]   ;;  %s1454_s3 = inlined_call_operand.vmem [shape: f32[16,4], index: 3, kind: input, shape index: {}]   ;;  %s1455_s4 = inlined_call_operand.vmem [shape: f32[1,4], index: 4, kind: input, shape index: {}]   ;;  %s1456_s5 = inlined_call_operand.vmem [shape: f32[4,2], index: 5, kind: input, shape index: {}]   ;;  %s1457_s6 = inlined_call_operand.vmem [shape: f32[1,2], index: 6, kind: input, shape index: {}]   ;;  %s1458_s7 = inlined_call_operand.hbm [shape: f32[1,2], index: 7, kind: output, shape index: {}]  }
   0x1   :  { %v44_v0 = vld [vmem:[%s1452_s1 + $0x80] sm:$0xff]  ;;  %v45_v1 = vld [vmem:[%s1452_s1 + $0x88] sm:$0xff]  ;;  %v46_v11 = vld [vmem:[%s1452_s1 + $0x90] sm:$0xff] }
   0x2   :  { %v28_v2 = vld [vmem:[%s1452_s1] sm:$0xff]  ;;  %v811_v3 = vpack.c.bf16 %v45_v1, %v44_v0  ;;  %v29_v4 = vld [vmem:[%s1452_s1 + $0x8] sm:$0xff]  ;;  %v47_v13 = vld [vmem:[%s1452_s1 + $0x98] sm:$0xff]  ;;  %v1140_v61 = vshrl.u32 %v158_v47, 7 }
   0x3   :  { %v76_v5 = vld [vmem:[%s1452_s1 + $0x180] sm:$0xff]  ;;  %v77_v6 = vld [vmem:[%s1452_s1 + $0x188] sm:$0xff]  ;;  %v813_v7 = vpack.c.bf16 %v29_v4, %v28_v2  ;;  %v30_v14 = vld [vmem:[%s1452_s1 + $0x10] sm:$0xff]  ;;  %v815_v16 = vpack.c.bf16 %v47_v13, %v46_v11 }
   0x4   :  { %v843_v8 = vpack.c.bf16 %v77_v6, %v76_v5  ;;  %v60_v9 = vld [vmem:[%s1452_s1 + $0x100] sm:$0xff]  ;;  %v61_v10 = vld [vmem:[%s1452_s1 + $0x108] sm:$0xff]  ;;  %812 = vmatprep.subr.bf16.mxu0 %v811_v3  ;;  %v31_v15 = vld [vmem:[%s1452_s1 + $0x18] sm:$0xff]  ;;  %v172_v11 = vsub.s32 3, %v1140_v61 }
   0x5   :  { %v845_v12 = vpack.c.bf16 %v61_v10, %v60_v9  ;;  %814 = vmatpush3.bf16.msra.mxu0 %v813_v7  ;;  %v817_v17 = vpack.c.bf16 %v31_v15, %v30_v14  ;;  %v78_v18 = vld [vmem:[%s1452_s1 + $0x190] sm:$0xff]  ;;  %v79_v19 = vld [vmem:[%s1452_s1 + $0x198] sm:$0xff]  ;;  %v48_v23 = vld [vmem:[%s1452_s1 + $0xa0] sm:$0xff]  ;;  %v164_v10 = vsub.s32 1, %v1140_v61 }
   0x6   :  { %844 = vmatprep.subr.bf16.mxu1 %v843_v8  ;;  %v62_v20 = vld [vmem:[%s1452_s1 + $0x110] sm:$0xff]  ;;  %v847_v21 = vpack.c.bf16 %v79_v19, %v78_v18  ;;  %v63_v22 = vld [vmem:[%s1452_s1 + $0x118] sm:$0xff]  ;;  %v49_v24 = vld [vmem:[%s1452_s1 + $0xa8] sm:$0xff]  ;;  %816 = vmatprep.subr.bf16.mxu0 %v815_v16 }
   0x7   :  { %846 = vmatpush3.bf16.msra.mxu1 %v845_v12  ;;  %v849_v25 = vpack.c.bf16 %v63_v22, %v62_v20  ;;  %v819_v26 = vpack.c.bf16 %v49_v24, %v48_v23  ;;  %v32_v27 = vld [vmem:[%s1452_s1 + $0x20] sm:$0xff]  ;;  %v33_v28 = vld [vmem:[%s1452_s1 + $0x28] sm:$0xff]  ;;  %v50_v35 = vld [vmem:[%s1452_s1 + $0xb0] sm:$0xff] }
   0x8   :  { %v80_v29 = vld [vmem:[%s1452_s1 + $0x1a0] sm:$0xff]  ;;  %848 = vmatprep.subr.bf16.mxu1 %v847_v21  ;;  %v81_v30 = vld [vmem:[%s1452_s1 + $0x1a8] sm:$0xff]  ;;  %v821_v33 = vpack.c.bf16 %v33_v28, %v32_v27  ;;  %v51_v36 = vld [vmem:[%s1452_s1 + $0xb8] sm:$0xff] }
   0x9   :  { %v64_v31 = vld [vmem:[%s1452_s1 + $0x120] sm:$0xff]  ;;  %v65_v32 = vld [vmem:[%s1452_s1 + $0x128] sm:$0xff]  ;;  %818 = vmatpush3.bf16.msra.mxu0 %v817_v17  ;;  %v851_v34 = vpack.c.bf16 %v81_v30, %v80_v29  ;;  %v34_v37 = vld [vmem:[%s1452_s1 + $0x30] sm:$0xff]  ;;  %v823_v39 = vpack.c.bf16 %v51_v36, %v50_v35 }
   0xa   :  { %820 = vmatprep.subr.bf16.mxu0 %v819_v26  ;;  %v853_v38 = vpack.c.bf16 %v65_v32, %v64_v31  ;;  %v35_v40 = vld [vmem:[%s1452_s1 + $0x38] sm:$0xff]  ;;  %v82_v41 = vld [vmem:[%s1452_s1 + $0x1b0] sm:$0xff]  ;;  %v52_v46 = vld [vmem:[%s1452_s1 + $0xc0] sm:$0xff] }
   0xb   :  { %850 = vmatpush3.bf16.msra.mxu1 %v849_v25  ;;  %v83_v42 = vld [vmem:[%s1452_s1 + $0x1b8] sm:$0xff]  ;;  %v66_v44 = vld [vmem:[%s1452_s1 + $0x130] sm:$0xff]  ;;  %v53_v48 = vld [vmem:[%s1452_s1 + $0xc8] sm:$0xff]  ;;  %v825_v49 = vpack.c.bf16 %v35_v40, %v34_v37 }
   0xc   :  { %852 = vmatprep.subr.bf16.mxu1 %v851_v34  ;;  %v855_v43 = vpack.c.bf16 %v83_v42, %v82_v41  ;;  %v67_v45 = vld [vmem:[%s1452_s1 + $0x138] sm:$0xff]  ;;  %v84_v50 = vld [vmem:[%s1452_s1 + $0x1c0] sm:$0xff]  ;;  %v85_v51 = vld [vmem:[%s1452_s1 + $0x1c8] sm:$0xff]  ;;  %v827_v53 = vpack.c.bf16 %v53_v48, %v52_v46 }
   0xd   :  { %822 = vmatpush3.bf16.msra.mxu0 %v821_v33  ;;  %v857_v52 = vpack.c.bf16 %v67_v45, %v66_v44  ;;  %v36_v54 = vld [vmem:[%s1452_s1 + $0x40] sm:$0xff]  ;;  %v37_v55 = vld [vmem:[%s1452_s1 + $0x48] sm:$0xff]  ;;  %v859_v57 = vpack.c.bf16 %v85_v51, %v84_v50  ;;  %v54_v59 = vld [vmem:[%s1452_s1 + $0xd0] sm:$0xff] }
   0xe   :  { %824 = vmatprep.subr.bf16.mxu0 %v823_v39  ;;  %v68_v56 = vld [vmem:[%s1452_s1 + $0x140] sm:$0xff]  ;;  %v69_v58 = vld [vmem:[%s1452_s1 + $0x148] sm:$0xff]  ;;  %v55_v60 = vld [vmem:[%s1452_s1 + $0xd8] sm:$0xff]  ;;  %v829_v0 = vpack.c.bf16 %v37_v55, %v36_v54  ;;  %v160_v39 = vsub.s32 0, %v1140_v61 }
   0xf   :  { %854 = vmatpush3.bf16.msra.mxu1 %v853_v38  ;;  %v86_v62 = vld [vmem:[%s1452_s1 + $0x1d0] sm:$0xff]  ;;  %v87_v63 = vld [vmem:[%s1452_s1 + $0x1d8] sm:$0xff]  ;;  %v861_v1 = vpack.c.bf16 %v69_v58, %v68_v56  ;;  %v831_v2 = vpack.c.bf16 %v55_v60, %v54_v59  ;;  %v56_v8 = vld [vmem:[%s1452_s1 + $0xe0] sm:$0xff] }
  0x10   :  { %856 = vmatprep.subr.bf16.mxu1 %v855_v43  ;;  %v38_v3 = vld [vmem:[%s1452_s1 + $0x50] sm:$0xff]  ;;  %v39_v4 = vld [vmem:[%s1452_s1 + $0x58] sm:$0xff]  ;;  %v863_v6 = vpack.c.bf16 %v87_v63, %v86_v62  ;;  %v57_v9 = vld [vmem:[%s1452_s1 + $0xe8] sm:$0xff]  ;;  %v168_v43 = vsub.s32 2, %v1140_v61 }
  0x11   :  { %826 = vmatpush3.bf16.msra.mxu0 %v825_v49  ;;  %v70_v5 = vld [vmem:[%s1452_s1 + $0x150] sm:$0xff]  ;;  %v71_v7 = vld [vmem:[%s1452_s1 + $0x158] sm:$0xff]  ;;  %v88_v12 = vld [vmem:[%s1452_s1 + $0x1e0] sm:$0xff]  ;;  %v833_v14 = vpack.c.bf16 %v39_v4, %v38_v3  ;;  %v835_v17 = vpack.c.bf16 %v57_v9, %v56_v8 }
  0x12   :  { %828 = vmatprep.subr.bf16.mxu0 %v827_v53  ;;  %v89_v13 = vld [vmem:[%s1452_s1 + $0x1e8] sm:$0xff]  ;;  %v40_v15 = vld [vmem:[%s1452_s1 + $0x60] sm:$0xff]  ;;  %v865_v16 = vpack.c.bf16 %v71_v7, %v70_v5  ;;  %v58_v23 = vld [vmem:[%s1452_s1 + $0xf0] sm:$0xff]  ;;  %v180_v53 = vsub.s32 5, %v1140_v61 }
  0x13   :  { %858 = vmatpush3.bf16.msra.mxu1 %v857_v52  ;;  %v41_v18 = vld [vmem:[%s1452_s1 + $0x68] sm:$0xff]  ;;  %v72_v19 = vld [vmem:[%s1452_s1 + $0x160] sm:$0xff]  ;;  %v867_v21 = vpack.c.bf16 %v89_v13, %v88_v12  ;;  %v59_v24 = vld [vmem:[%s1452_s1 + $0xf8] sm:$0xff] }
  0x14   :  { %860 = vmatprep.subr.bf16.mxu1 %v859_v57  ;;  %v1186_v20 = vld [vmem:[%s1451_s0] sm:$0xff]  ;;  %v73_v22 = vld [vmem:[%s1452_s1 + $0x168] sm:$0xff]  ;;  %v90_v27 = vld [vmem:[%s1452_s1 + $0x1f0] sm:$0xff]  ;;  %v837_v29 = vpack.c.bf16 %v41_v18, %v40_v15  ;;  %v839_v31 = vpack.c.bf16 %v59_v24, %v58_v23  ;;  %v188_v57 = vsub.s32 7, %v1140_v61 }
  0x15   :  { %830 = vmatpush3.bf16.msra.mxu0 %v829_v0  ;;  %v165_v25 = vrot.slane %v1186_v20, %v164_v10  ;;  %v173_v26 = vrot.slane %v1186_v20, %v172_v11  ;;  %v91_v28 = vld [vmem:[%s1452_s1 + $0x1f8] sm:$0xff]  ;;  %v869_v30 = vpack.c.bf16 %v73_v22, %v72_v19  ;;  %v42_v32 = vld [vmem:[%s1452_s1 + $0x70] sm:$0xff]  ;;  %v108_v37 = vld [vmem:[%s1452_s1 + $0x280] sm:$0xff]  ;;  %v161_v54 = vrot.slane %v1186_v20, %v160_v39 }
  0x16   :  { %832 = vmatprep.subr.bf16.mxu0 %v831_v2  ;;  %v43_v33 = vld [vmem:[%s1452_s1 + $0x78] sm:$0xff]  ;;  %v74_v34 = vld [vmem:[%s1452_s1 + $0x170] sm:$0xff]  ;;  %v871_v35 = vpack.c.bf16 %v91_v28, %v90_v27  ;;  %v109_v38 = vld [vmem:[%s1452_s1 + $0x288] sm:$0xff]  ;;  %v169_v59 = vrot.slane %v1186_v20, %v168_v43  ;;  %v189_v9 = vrot.slane %v1186_v20, %v188_v57 }
  0x17   :  { %862 = vmatpush3.bf16.msra.mxu1 %v861_v1  ;;  %262 = vmatprep.mubr.f32.mxu0 %v165_v25  ;;  %v75_v36 = vld [vmem:[%s1452_s1 + $0x178] sm:$0xff]  ;;  %v140_v40 = vld [vmem:[%s1452_s1 + $0x380] sm:$0xff]  ;;  %v141_v41 = vld [vmem:[%s1452_s1 + $0x388] sm:$0xff]  ;;  %v841_v42 = vpack.c.bf16 %v43_v33, %v42_v32  ;;  %v875_v45 = vpack.c.bf16 %v109_v38, %v108_v37 }
  0x18   :  { %864 = vmatprep.subr.bf16.mxu1 %v863_v6  ;;  %332 = vmatprep.mubr.f32.mxu1 %v173_v26  ;;  %v873_v44 = vpack.c.bf16 %v75_v36, %v74_v34  ;;  %v92_v46 = vld [vmem:[%s1452_s1 + $0x200] sm:$0xff]  ;;  %v93_v47 = vld [vmem:[%s1452_s1 + $0x208] sm:$0xff]  ;;  %v907_v49 = vpack.c.bf16 %v141_v41, %v140_v40  ;;  %v110_v51 = vld [vmem:[%s1452_s1 + $0x290] sm:$0xff]  ;;  %v181_v6 = vrot.slane %v1186_v20, %v180_v53 }
  0x19   :  { %834 = vmatpush3.bf16.msra.mxu0 %v833_v14  ;;  %v124_v48 = vld [vmem:[%s1452_s1 + $0x300] sm:$0xff]  ;;  %v125_v50 = vld [vmem:[%s1452_s1 + $0x308] sm:$0xff]  ;;  %v111_v52 = vld [vmem:[%s1452_s1 + $0x298] sm:$0xff]  ;;  %v877_v58 = vpack.c.bf16 %v93_v47, %v92_v46 }
  0x1a   :  { %836 = vmatprep.subr.bf16.mxu0 %v835_v17  ;;  %v142_v55 = vld [vmem:[%s1452_s1 + $0x390] sm:$0xff]  ;;  %v143_v56 = vld [vmem:[%s1452_s1 + $0x398] sm:$0xff]  ;;  %v909_v60 = vpack.c.bf16 %v125_v50, %v124_v48  ;;  %v879_v62 = vpack.c.bf16 %v111_v52, %v110_v51  ;;  %v112_v4 = vld [vmem:[%s1452_s1 + $0x2a0] sm:$0xff] }
  0x1b   :  { %866 = vmatpush3.bf16.msra.mxu1 %v865_v16  ;;  %v94_v63 = vld [vmem:[%s1452_s1 + $0x210] sm:$0xff]  ;;  %v95_v0 = vld [vmem:[%s1452_s1 + $0x218] sm:$0xff]  ;;  %v911_v2 = vpack.c.bf16 %v143_v56, %v142_v55  ;;  %v113_v5 = vld [vmem:[%s1452_s1 + $0x2a8] sm:$0xff] }
  0x1c   :  { %868 = vmatprep.subr.bf16.mxu1 %v867_v21  ;;  %v126_v1 = vld [vmem:[%s1452_s1 + $0x310] sm:$0xff]  ;;  %v127_v3 = vld [vmem:[%s1452_s1 + $0x318] sm:$0xff]  ;;  %v144_v7 = vld [vmem:[%s1452_s1 + $0x3a0] sm:$0xff]  ;;  %v881_v10 = vpack.c.bf16 %v95_v0, %v94_v63  ;;  %v883_v12 = vpack.c.bf16 %v113_v5, %v112_v4 }
  0x1d   :  { %838 = vmatpush3.bf16.msra.mxu0 %v837_v29  ;;  %v145_v8 = vld [vmem:[%s1452_s1 + $0x3a8] sm:$0xff]  ;;  %v913_v11 = vpack.c.bf16 %v127_v3, %v126_v1  ;;  %v96_v13 = vld [vmem:[%s1452_s1 + $0x220] sm:$0xff]  ;;  %v114_v18 = vld [vmem:[%s1452_s1 + $0x2b0] sm:$0xff] }
  0x1e   :  { %840 = vmatprep.subr.bf16.mxu0 %v839_v31  ;;  %v97_v14 = vld [vmem:[%s1452_s1 + $0x228] sm:$0xff]  ;;  %v128_v15 = vld [vmem:[%s1452_s1 + $0x320] sm:$0xff]  ;;  %v915_v16 = vpack.c.bf16 %v145_v8, %v144_v7  ;;  %v115_v19 = vld [vmem:[%s1452_s1 + $0x2b8] sm:$0xff] }
  0x1f   :  { %870 = vmatpush3.bf16.msra.mxu1 %v869_v30  ;;  %v129_v17 = vld [vmem:[%s1452_s1 + $0x328] sm:$0xff]  ;;  %v146_v21 = vld [vmem:[%s1452_s1 + $0x3b0] sm:$0xff]  ;;  %v147_v22 = vld [vmem:[%s1452_s1 + $0x3b8] sm:$0xff]  ;;  %v885_v23 = vpack.c.bf16 %v97_v14, %v96_v13  ;;  %v887_v25 = vpack.c.bf16 %v115_v19, %v114_v18 }
  0x20   :  { %872 = vmatprep.subr.bf16.mxu1 %v871_v35  ;;  %v917_v24 = vpack.c.bf16 %v129_v17, %v128_v15  ;;  %v98_v26 = vld [vmem:[%s1452_s1 + $0x230] sm:$0xff]  ;;  %v99_v27 = vld [vmem:[%s1452_s1 + $0x238] sm:$0xff]  ;;  %v919_v29 = vpack.c.bf16 %v147_v22, %v146_v21  ;;  %v116_v31 = vld [vmem:[%s1452_s1 + $0x2c0] sm:$0xff] }
  0x21   :  { %842 = vmatpush3.bf16.msra.mxu0 %v841_v42  ;;  %v130_v28 = vld [vmem:[%s1452_s1 + $0x330] sm:$0xff]  ;;  %v131_v30 = vld [vmem:[%s1452_s1 + $0x338] sm:$0xff]  ;;  %v117_v32 = vld [vmem:[%s1452_s1 + $0x2c8] sm:$0xff] }
  0x22   :  { %876 = vmatprep.subr.bf16.mxu0 %v875_v45  ;;  %v148_v33 = vld [vmem:[%s1452_s1 + $0x3c0] sm:$0xff]  ;;  %v149_v34 = vld [vmem:[%s1452_s1 + $0x3c8] sm:$0xff] }
  0x23   :  { %874 = vmatpush3.bf16.msra.mxu1 %v873_v44 }
  0x24   :  { %908 = vmatprep.subr.bf16.mxu1 %v907_v49  ;;  %263 = vmatmul.mubr.f32.vlgmr.msra.gmra.mrb[0].mxu0 %v161_v54 }
  0x25   :  { %878 = vmatpush3.bf16.msra.mxu0 %v877_v58  ;;  %402 = vmatprep.mubr.f32.mxu0 %v181_v6 }
  0x26   :  { %333 = vmatmul.mubr.f32.vlgmr.msra.gmra.mrb[0].mxu1 %v169_v59  ;;  %880 = vmatprep.subr.bf16.mxu0 %v879_v62 }
  0x27   :  { %910 = vmatpush3.bf16.msra.mxu1 %v909_v60  ;;  %472 = vmatprep.mubr.f32.mxu1 %v189_v9 }
  0x28   :  { %912 = vmatprep.subr.bf16.mxu1 %v911_v2 }
  0x29   :  { %882 = vmatpush3.bf16.msra.mxu0 %v881_v10 }
  0x2a   :  { %884 = vmatprep.subr.bf16.mxu0 %v883_v12 }
  0x2b   :  { %914 = vmatpush3.bf16.msra.mxu1 %v913_v11 }
  0x2c   :  { %916 = vmatprep.subr.bf16.mxu1 %v915_v16 }
  0x2d   :  { %12 = vsyncpa [#allocation3], 0  ;;  %886 = vmatpush3.bf16.msra.mxu0 %v885_v23  ;;  %v889_v35 = vpack.c.bf16 %v99_v27, %v98_v26  ;;  %v921_v36 = vpack.c.bf16 %v131_v30, %v130_v28  ;;  %v891_v37 = vpack.c.bf16 %v117_v32, %v116_v31  ;;  %v100_v38 = vld [vmem:[%s1452_s1 + $0x240] sm:$0xff]  ;;  %v101_v39 = vld [vmem:[%s1452_s1 + $0x248] sm:$0xff]  ;;  %v923_v41 = vpack.c.bf16 %v149_v34, %v148_v33  ;;  %s973_s30 = smov [#allocation2]  }
  0x2e   :  { %888 = vmatprep.subr.bf16.mxu0 %v887_v25  ;;  %v132_v40 = vld [vmem:[%s1452_s1 + $0x340] sm:$0xff]  ;;  %v133_v42 = vld [vmem:[%s1452_s1 + $0x348] sm:$0xff]  ;;  %v118_v43 = vld [vmem:[%s1452_s1 + $0x2d0] sm:$0xff]  ;;  %v893_v47 = vpack.c.bf16 %v101_v39, %v100_v38  ;;  %v176_v16 = vsub.s32 4, %v1140_v61  ;;  %v184_v18 = vsub.s32 6, %v1140_v61  ;;  %v970_v25 = vmov 0.0|0.0  }
  0x2f   :  { %918 = vmatpush3.bf16.msra.mxu1 %v917_v24  ;;  %v119_v44 = vld [vmem:[%s1452_s1 + $0x2d8] sm:$0xff]  ;;  %v150_v45 = vld [vmem:[%s1452_s1 + $0x3d0] sm:$0xff]  ;;  %v925_v48 = vpack.c.bf16 %v133_v42, %v132_v40  ;;  %v120_v55 = vld [vmem:[%s1452_s1 + $0x2e0] sm:$0xff]  ;;  %vm971_vm0 = vmmov 0   ;;  %v972_v26 = vmov 0.0   ;;  %vm561_vm1 = vcmask 1043456  }
  0x30   :  { %920 = vmatprep.subr.bf16.mxu1 %v919_v29  ;;  %v151_v46 = vld [vmem:[%s1452_s1 + $0x3d8] sm:$0xff]  ;;  %v895_v49 = vpack.c.bf16 %v119_v44, %v118_v43  ;;  %v102_v50 = vld [vmem:[%s1452_s1 + $0x250] sm:$0xff]  ;;  %v121_v56 = vld [vmem:[%s1452_s1 + $0x2e8] sm:$0xff]  ;;  %v177_v21 = vrot.slane %v1186_v20, %v176_v16  ;;  %v185_v22 = vrot.slane %v1186_v20, %v184_v18  ;;  %vm481_vm2 = vcmask 130048   ;;  %s643_s8 = sshll.u32 %s973_s30, 4  ;;  %s644_s8 = int_to_ptr.vmem [resolvable:$true] %s643_s8 }
  0x31   :  { %890 = vmatpush3.bf16.msra.mxu0 %v889_v35  ;;  %v103_v51 = vld [vmem:[%s1452_s1 + $0x258] sm:$0xff]  ;;  %v134_v52 = vld [vmem:[%s1452_s1 + $0x350] sm:$0xff]  ;;  %v927_v53 = vpack.c.bf16 %v151_v46, %v150_v45  ;;  %v152_v57 = vld [vmem:[%s1452_s1 + $0x3e0] sm:$0xff]  ;;  %v899_v62 = vpack.c.bf16 %v121_v56, %v120_v55  ;;  %vm557_vm3 = vcmask 31744   ;;  %vm635_vm4 = vcmask 8192   ;;  %s946_s9 = scalar_lea.vmem %s644_s8, 16  ;;  %p951_p1 = scmp.lt.s32.totalorder %s644_s8, %s644_s8 }
  0x32   :  { %892 = vmatprep.subr.bf16.mxu0 %v891_v37  ;;  %v135_v54 = vld [vmem:[%s1452_s1 + $0x358] sm:$0xff]  ;;  %v153_v58 = vld [vmem:[%s1452_s1 + $0x3e8] sm:$0xff]  ;;  %v897_v59 = vpack.c.bf16 %v103_v51, %v102_v50  ;;  %v104_v63 = vld [vmem:[%s1452_s1 + $0x260] sm:$0xff]  ;;  %p947_p0 = scmp.ne.s32.totalorder %s644_s8, %s946_s9 }
  0x33   :  { %922 = vmatpush3.bf16.msra.mxu1 %v921_v36  ;;  %v929_v60 = vpack.c.bf16 %v135_v54, %v134_v52  ;;  %v105_v0 = vld [vmem:[%s1452_s1 + $0x268] sm:$0xff]  ;;  %v136_v1 = vld [vmem:[%s1452_s1 + $0x360] sm:$0xff]  ;;  %v931_v2 = vpack.c.bf16 %v153_v58, %v152_v57  ;;  %v122_v4 = vld [vmem:[%s1452_s1 + $0x2f0] sm:$0xff] }
  0x34   :  { %924 = vmatprep.subr.bf16.mxu1 %v923_v41  ;;  %v137_v3 = vld [vmem:[%s1452_s1 + $0x368] sm:$0xff]  ;;  %v123_v5 = vld [vmem:[%s1452_s1 + $0x2f8] sm:$0xff]  ;;  %v154_v6 = vld [vmem:[%s1452_s1 + $0x3f0] sm:$0xff]  ;;  %v901_v8 = vpack.c.bf16 %v105_v0, %v104_v63 }
  0x35   :  { %894 = vmatpush3.bf16.msra.mxu0 %v893_v47  ;;  %v155_v7 = vld [vmem:[%s1452_s1 + $0x3f8] sm:$0xff]  ;;  %v933_v9 = vpack.c.bf16 %v137_v3, %v136_v1  ;;  %v903_v10 = vpack.c.bf16 %v123_v5, %v122_v4  ;;  %v106_v11 = vld [vmem:[%s1452_s1 + $0x270] sm:$0xff]  ;;  %v478_v23 = vld [vmem:[%s1454_s3] sm:$0xff] }
  0x36   :  { %896 = vmatprep.subr.bf16.mxu0 %v895_v49  ;;  %v107_v12 = vld [vmem:[%s1452_s1 + $0x278] sm:$0xff]  ;;  %v935_v13 = vpack.c.bf16 %v155_v7, %v154_v6  ;;  %v138_v14 = vld [vmem:[%s1452_s1 + $0x370] sm:$0xff]  ;;  %v479_v61 = vld [vmem:[%s1454_s3 + $0x8] sm:$0xff] }
  0x37   :  { %926 = vmatpush3.bf16.msra.mxu1 %v925_v48  ;;  %v139_v15 = vld [vmem:[%s1452_s1 + $0x378] sm:$0xff]  ;;  %v905_v17 = vpack.c.bf16 %v107_v12, %v106_v11  ;;  %v940_v24 = vpack.c.bf16 %v479_v61, %v478_v23  ;;  %v555_v20 = vld [vmem:[%s1456_s5] sm:$0xf] }
  0x38   :  { %928 = vmatprep.subr.bf16.mxu1 %v927_v53  ;;  %v937_v19 = vpack.c.bf16 %v139_v15, %v138_v14  ;;  %v156_v28 = vld [vmem:[%s1453_s2] sm:$0x1] }
  0x39   :  { %898 = vmatpush3.bf16.msra.mxu0 %v897_v59  ;;  %v480_v44 = vld [vmem:[%s1455_s4] sm:$0x1]  ;;  %s950_s4 = scalar_lea.vmem %s644_s8, 32 }
  0x3a   :  { %900 = vmatprep.subr.bf16.mxu0 %v899_v62  ;;  %v556_v48 = vld [vmem:[%s1457_s6] sm:$0x1]  ;;  %p952_p2 = scmp.lt.s32.totalorder %s950_s4, %s946_s9 }
  0x3b   :  { %930 = vmatpush3.bf16.msra.mxu1 %v929_v60 }
  0x3c   :  { %932 = vmatprep.subr.bf16.mxu1 %v931_v2  ;;  %p953_p3 = por %p952_p2, %p951_p1 }
  0x3d   :  { %902 = vmatpush3.bf16.msra.mxu0 %v901_v8 }
  0x3e   :  { %904 = vmatprep.subr.bf16.mxu0 %v903_v10  ;;  %p954_p4 = pnand %p953_p3, %p947_p0 }
  0x3f   :  { %934 = vmatpush3.bf16.msra.mxu1 %v933_v9 }
  0x40   :  { %936 = vmatprep.subr.bf16.mxu1 %v935_v13 }
  0x41   :  { %906 = vmatpush3.bf16.msra.mxu0 %v905_v17 }
  0x42   :  { %939 = vmatprep.subr.bf16.mxu0 %v970_v25 }
  0x43   :  { %938 = vmatpush3.bf16.msra.mxu1 %v937_v19 }
  0x44   :  { %403 = vmatmul.mubr.f32.vlgmr.msra.gmra.mrb[2].mxu0 %v177_v21  ;;  %806 = vmatprep.subr.mxu1 %v972_v26 }
  0x45   :  { %941 = vmatpush3.bf16.msra.mxu0 %v940_v24  ;;  %803 = vmatprep.mubr.msk.f32.mxu0 %vm971_vm0, %v972_v26 }
  0x46   :  { %473 = vmatmul.mubr.f32.vlgmr.msra.gmra.mrb[2].mxu1 %v185_v22 }
  0x47   :  { %808 = vmatprep.mubr.msk.f32.mxu1 %vm971_vm0, %v972_v26  ;;  %807 = vmatpush3.msk.msra.mxu1 %vm561_vm1, %v555_v20 }
  0xf7   :  { %v686_v27 = vpop.f32.mrb[0].mxu0 }
  0xf8   :  { %v687_v29 = vpop.f32.mrb[1].mxu0 }
  0xf9   :  { %v721_v30 = vpop.f32.mrb[0].mxu1  ;;  %v688_v31 = vadd.f32 %v687_v29, %v686_v27 }
  0xfa   :  { %v722_v32 = vpop.f32.mrb[1].mxu1 }
  0xfb   :  { %v723_v33 = vadd.f32 %v722_v32, %v721_v30  ;;  %v265_v34 = vadd.f32 %v688_v31, %v156_v28 }
  0xfd   :  { %v335_v35 = vadd.f32 %v723_v33, %v265_v34 }
 0x117   :  { %v756_v36 = vpop.f32.mrb[2].mxu0 }
 0x118   :  { %v757_v37 = vpop.f32.mrb[3].mxu0 }
 0x119   :  { %v791_v38 = vpop.f32.mrb[2].mxu1  ;;  %v758_v39 = vadd.f32 %v757_v37, %v756_v36 }
 0x11a   :  { %v792_v40 = vpop.f32.mrb[3].mxu1 }
 0x11b   :  { %v793_v41 = vadd.f32 %v792_v40, %v791_v38  ;;  %v405_v42 = vadd.f32 %v758_v39, %v335_v35 }
 0x11d   :  { %v475_v43 = vadd.f32 %v793_v41, %v405_v42 }
 0x11f   :  { %804 = vmatmul.mubr.msk.f32.vlgmr.msra.gmra.mrb[4].mxu0 %vm481_vm2, %v475_v43 }
 0x1f2   :  { %v551_v45 = vpop.f32.mrb[4].mxu0 }
 0x1f3   :  { %v552_v46 = vadd.f32 %v551_v45, %v480_v44  ;;  %v805_v47 = vpop.f32.mrb[5].mxu0 }
 0x1f5   :  { %809 = vmatmul.mubr.msk.f32.vlgmr.msra.gmra.mrb[4].mxu1 %vm557_vm3, %v552_v46 }
 0x2c8   :  { %v631_v49 = vpop.f32.mrb[4].mxu1 }
 0x2c9   :  { %v632_v50 = vadd.f32 %v631_v49, %v556_v48  ;;  %v810_v51 = vpop.f32.mrb[5].mxu1 }
 0x2cb   :  { %636 = vst.msk [vmem:[#allocation2] sm:$0x1] %vm635_vm4, %v632_v50 }
 0x2cc   :  { %957 = shalt.err (!%p954_p4)
}
 0x2cd   :  { %s958_s6 = scalar_lea.hbm %s1458_s7, 16 }
 0x2ce   :  { %p959_p5 = scmp.ne.s32.totalorder %s1458_s7, %s958_s6  ;;  %p962_p6 = scmp.lt.u32.totalorder %s958_s6, %s1458_s7 }
 0x2d0   :  { %p964_p7 = pnand %p962_p6, %p959_p5 }
 0x2d2   :  { %967 = shalt.err (!%p964_p7)
}
 0x2d3   :  { %646 = dma.vmem_to_hbm [thread:$0]  %s644_s8, 16, %s1458_s7, [#allocation3]  }
 0x2d4   :  { %968 = dma.done.wait [#allocation3], 16  }
 0x2d5   :  { %969 = vsyncadd [#allocation3], 4294967280 }
 0x2d6   :  { %650 = vsyncpa [#allocation3], 1 }

// kernel: diffusionnet_ppi_forward.2
= control target key start
LH: loop header
LB: loop body
LE: loop exit
PB: predicated region body
PF: predicated region fallthrough
CT: control target
= control target key end

     0   :  { %s4822_s0 = inlined_call_operand.vmem [shape: f32[2,64,128], index: 0, kind: input, shape index: {}]   ;;  %s4823_s1 = inlined_call_operand.vmem [shape: f32[2,64,1], index: 1, kind: input, shape index: {}]   ;;  %s4824_s2 = inlined_call_operand.vmem [shape: f32[2,16,1], index: 2, kind: input, shape index: {}]   ;;  %s4825_s3 = inlined_call_operand.vmem [shape: f32[2,192,16], index: 3, kind: input, shape index: {}]   ;;  %s4826_s4 = inlined_call_operand.vmem [shape: f32[2,4,1,128], index: 4, kind: input, shape index: {}]   ;;  %s4827_s5 = inlined_call_operand.vmem [shape: f32[2,4,128,256], index: 5, kind: input, shape index: {}]   ;;  %s4828_s6 = inlined_call_operand.hbm [shape: f32[2,4,128,256], index: 6, kind: input, shape index: {}]   ;;  %s4829_s7 = inlined_call_operand.vmem [shape: f32[2,4,128,128], index: 7, kind: input, shape index: {}]   ;;  %s4830_s8 = inlined_call_operand.hbm [shape: f32[2,4,128,128], index: 8, kind: input, shape index: {}]   ;;  %s4831_s9 = inlined_call_operand.hbm [shape: f32[2,4,128,128], index: 9, kind: input, shape index: {}]   ;;  %s4832_s10 = inlined_call_operand.vmem [shape: f32[2,4,1,128], index: 10, kind: input, shape index: {}]   ;;  %s4833_s11 = inlined_call_operand.hbm [shape: f32[2,4,128,128], index: 11, kind: input, shape index: {}]   ;;  %s4834_s12 = inlined_call_operand.vmem [shape: f32[2,4,1,128], index: 12, kind: input, shape index: {}]   ;;  %s4835_s13 = inlined_call_operand.hbm [shape: f32[2,4,128,128], index: 13, kind: input, shape index: {}]   ;;  %s4836_s14 = inlined_call_operand.vmem [shape: f32[2,4,1,128], index: 14, kind: input, shape index: {}]   ;;  %s4837_s15 = inlined_call_operand.vmem [shape: f32[2,64,128], index: 15, kind: output, shape index: {}]  }
   0x1   :  { %4857 = sst [smem:[#allocation27_spill]] %s4822_s0 }
   0x2   :  { %4858 = sst [smem:[#allocation28_spill]] %s4823_s1 }
   0x3   :  { %4859 = sst [smem:[#allocation29_spill]] %s4824_s2 }
   0x4   :  { %4860 = sst [smem:[#allocation30_spill]] %s4825_s3 }
   0x5   :  { %4861 = sst [smem:[#allocation31_spill]] %s4826_s4 }
   0x6   :  { %4862 = sst [smem:[#allocation32_spill]] %s4827_s5 }
   0x7   :  { %4863 = sst [smem:[#allocation33_spill]] %s4828_s6 }
   0x8   :  { %4864 = sst [smem:[#allocation34_spill]] %s4829_s7 }
   0x9   :  { %4865 = sst [smem:[#allocation35_spill]] %s4830_s8 }
   0xa   :  { %4866 = sst [smem:[#allocation36_spill]] %s4831_s9 }
   0xb   :  { %4867 = sst [smem:[#allocation37_spill]] %s4832_s10 }
   0xc   :  { %4868 = sst [smem:[#allocation38_spill]] %s4833_s11 }
   0xd   :  { %4869 = sst [smem:[#allocation39_spill]] %s4834_s12 }
   0xe   :  { %4870 = sst [smem:[#allocation40_spill]] %s4835_s13 }
   0xf   :  { %4871 = sst [smem:[#allocation41_spill]] %s4836_s14 }
  0x10   :  { %4872 = sst [smem:[#allocation42_spill]] %s4837_s15 }
  0x11   :  { %20 = vsyncpa [#allocation4], 0 }
  0x12   :  { %22 = vsyncpa [#allocation4 + $0x1], 0 }
  0x13   :  { %23 = vsyncpa [#allocation6], 0 }
  0x14   :  { %25 = vsyncpa [#allocation6 + $0x1], 0 }
  0x15   :  { %26 = vsyncpa [#allocation9], 0 }
  0x16   :  { %28 = vsyncpa [#allocation9 + $0x1], 0  ;;  %s4058_s18 = smov 0   ;;  %s4060_s19 = smov 0  }
  0x17   :  { %s4062_s20 = smov 0   ;;  %s4064_s21 = smov 0  }
  0x18   :  { %s4066_s22 = smov 0   ;;  %s4068_s23 = smov 0  }
  0x19   :  { %s4070_s24 = smov 0   ;;  %s4072_s25 = smov 0  }
  0x1a LB: > { %4873 = sst [smem:[#allocation14_spill]] %s3941_s19  ;;  %s4839_s26 = sadd.s32 4294967295, %s3965_s25   ;;  %s3965_s25 = sphi %s4072_s25, %s34_s25   ;;  %s3961_s24 = sphi %s4070_s24, %s4930_s24   ;;  %s3957_s23 = sphi %s4068_s23, %s4929_s23   ;;  %s3953_s22 = sphi %s4066_s22, %s4928_s22   ;;  %s3949_s21 = sphi %s4064_s21, %s4927_s21   ;;  %s3945_s20 = sphi %s4062_s20, %s4926_s20   ;;  %s3941_s19 = sphi %s4060_s19, %s4925_s19   ;;  %s3937_s18 = sphi %s4058_s18, %s4924_s18  }
  0x1b   : > { %4874 = sst [smem:[#allocation15_spill]] %s3945_s20  ;;  %s43_s27 = sadd.s32 1, %s3957_s23 }
  0x1c   : > { %4875 = sst [smem:[#allocation16_spill]] %s3949_s21  ;;  %p44_p0 = scmp.ge.s32.totalorder %s43_s27, 4 }
  0x1d   : > { %4876 = sst [smem:[#allocation17_spill]] %s3953_s22  ;;  %s46_s28 = sadd.s32 1, %s3961_s24 }
  0x1e   : > { %4877 = sst [smem:[#allocation18_spill]] %s3957_s23  ;;  %s215_s29 = sadd.s32 1, %s3945_s20 }
  0x1f   : > { %4878 = sst [smem:[#allocation19_spill]] %s3961_s24  ;;  %p222_p1 = scmp.ne.s32.totalorder %s3945_s20, %s3941_s19 }
  0x20   : > { %4879 = sst [smem:[#allocation20_spill]] %s3965_s25  ;;  %s4932_s27 = smov (%p44_p0, %s43_s27), 0 }
  0x21   : > { %4880 = sst [smem:[#allocation21_spill]] %s4932_s27  ;;  %s4934_s28 = smov (!%p44_p0, %s46_s28), %s3961_s24 }
  0x22   : > { %s211_s30 = ssub.s32 %s3957_s23, %s4932_s27  ;;  %p223_p2 = scmp.eq.s32.totalorder %s3965_s25, 0 }
  0x23   : > { %p48_p3 = scmp.ge.s32.totalorder %s4934_s28, 2  ;;  %p228_p4 = scmp.ne.s32.totalorder %s3941_s19, %s3937_s18 }
  0x24   : > { %p224_p5 = por %p223_p2, %p222_p1  ;;  %p229_p6 = scmp.eq.s32.totalorder %s4839_s26, 0 }
  0x25   : > { %s4936_s28 = smov (%p48_p3, %s4934_s28), 0  ;;  %p3640_p8 = scmp.lt.s32.totalorder %s3965_s25, 8 }
  0x26   : > { %4881 = sst [smem:[#allocation22_spill]] %s4936_s28  ;;  %p4113_p7 = por %p229_p6, %p228_p4 }
  0x27   : > { %s210_s17 = ssub.s32 %s3961_s24, %s4936_s28  ;;  %s4121_s15 = sand.u32 1, %s3945_s20  }
  0x28   : > { %s4882_s16 = scalar_select %p4113_p7, 1, 0 }
  0x29   : > { %s212_s27 = sor.u32 %s211_s30, %s210_s17  ;;  %p4123_p10 = pnand %p3640_p8, %p224_p5 }
  0x2a   : > { %p213_p9 = scmp.eq.s32.totalorder %s212_s27, 0  ;;  %s4841_s26 = sand.u32 1, %s3965_s25  }
  0x2b   : > { %s4129_s14 = sshll.u32 %s4121_s15, 7  ;;  %s2825_s10 = sshll.u32 %s3957_s23, 4 }
  0x2c   : > { %s4132_s12 = scalar_select %p213_p9, %s3945_s20, %s215_s29  }
  0x2d   : > { %s2826_s28 = sshll.u32 %s3961_s24, 6  ;;  %s595_s7 = scalar_lea.vmem [#allocation5], %s4129_s14 }
  0x2e   : > { %4884 = sst [smem:[#allocation23_spill]] %s4132_s12  ;;  %s604_s5 = sshll.u32 %s595_s7, 4  ;;  %s4137_s5 = int_to_ptr.vmem [resolvable:$true] %s604_s5 }
  0x2f   : > { %s601_s30 = sadd.s32 %s2826_s28, %s2825_s10  ;;  %s4885_s8 = sld [smem:[#allocation35_spill]] }
  0x30   : > { %s4139_s17 = sshll.u32 %s601_s30, 7  ;;  %s4149_s29 = scalar_lea.sflag [#allocation6], %s4841_s26 }
  0x31   : > { %p4155_p12 = pneg %p4123_p10 }
  0x35   : > { %s4145_s3 = scalar_lea.hbm %s4885_s8, %s4139_s17  ;;  %s3746_s28 = scalar_lea.hbm %s4885_s8, 16384 }
  0x36   : > { %s3741_s12 = scalar_lea.hbm %s4145_s3, 2048  ;;  %p3747_p1 = scmp.lt.u32.totalorder %s4145_s3, %s4885_s8 }
  0x37   : > { %p3742_p11 = scmp.ne.s32.totalorder %s4145_s3, %s3741_s12  ;;  %p3748_p2 = scmp.lt.u32.totalorder %s3746_s28, %s3741_s12 }
  0x38   : > { %p3750_p4 = scmp.lt.u32.totalorder %s3741_s12, %s4145_s3 }
  0x39   : > { %p3744_p13 = pnand %p4155_p12, %p3742_p11  ;;  %p3749_p3 = por %p3748_p2, %p3747_p1 }
  0x3b   : > { %p3745_p0 = pneg %p3744_p13  ;;  %p3751_p5 = por %p3750_p4, %p3749_p3 }
  0x3d   : > { %p3752_p6 = pnand %p3751_p5, %p3745_p0 }
  0x3f   : > { %3755 = shalt.err (!%p3752_p6)
}
  0x40   : > { %s3756_s26 = scalar_lea.vmem %s4137_s5, 2048  ;;  %s3967_s4 = smov [#allocation5]  }
  0x41   : > { %p3757_p8 = scmp.ne.s32.totalorder %s4137_s5, %s3756_s26  ;;  %s3761_s10 = sshll.u32 %s3967_s4, 4  ;;  %s3762_s10 = int_to_ptr.vmem [resolvable:$false] %s3761_s10 }
  0x42   : > { %s3763_s30 = scalar_lea.vmem %s3762_s10, 4096  ;;  %p3764_p13 = scmp.lt.s32.totalorder %s4137_s5, %s3762_s10 }
  0x43   : > { %p3759_p9 = pnand %p3757_p8, %p4155_p12  ;;  %p3765_p7 = scmp.lt.s32.totalorder %s3763_s30, %s3756_s26 }
  0x45   : > { %p3760_p11 = pneg %p3759_p9  ;;  %p3766_p1 = por %p3765_p7, %p3764_p13 }
  0x47   : > { %p3767_p2 = pnand %p3766_p1, %p3760_p11 }
  0x49   : > { %3770 = shalt.err (!%p3767_p2)
}
  0x4a   : > { %s4843_s12 = smov 128   ;;  %s4845_s28 = smov 8  }
  0x4b   : > { %3630 = dma.hbm_to_vmem [thread:$0]  (!%p4123_p10), %s4145_s3, 2048, %s4137_s5, %s4149_s29, %s4843_s12, %s4843_s12, %s4845_s28  }
  0x4c   : > { %p2840_p7 = scmp.ge.s32.totalorder %s3965_s25, 1  ;;  %p711_p0 = scmp.lt.s32.totalorder %s3965_s25, 9 }
  0x4d   : > { %s4888_s11 = sld [smem:[#allocation38_spill]]  ;;  %s651_s30 = scalar_lea.vmem [#allocation8], %s4129_s14 }
  0x4e   : > { %p4184_p3 = pnand %p2840_p7, %p711_p0  ;;  %s660_s8 = sshll.u32 %s651_s30, 4  ;;  %s4195_s8 = int_to_ptr.vmem [resolvable:$true] %s660_s8 }
  0x4f   : > { %s4889_s3 = sand.u32 1, %s3965_s25  }
  0x50   : > { %s4887_s26 = scalar_select %p4184_p3, 1, 0 }
  0x51   : > { %s4199_s5 = scalar_lea.sflag [#allocation9], %s4889_s3 }
  0x53   : > { %s4192_s10 = scalar_lea.hbm %s4888_s11, %s4139_s17  ;;  %s3776_s4 = scalar_lea.hbm %s4888_s11, 16384 }
  0x54   : > { %s3771_s12 = scalar_lea.hbm %s4192_s10, 2048  ;;  %p3777_p8 = scmp.lt.u32.totalorder %s4192_s10, %s4888_s11 }
  0x55   : > { %p3772_p4 = scmp.ne.s32.totalorder %s4192_s10, %s3771_s12  ;;  %p3778_p9 = scmp.lt.u32.totalorder %s3776_s4, %s3771_s12 }
  0x56   : > { %p3780_p13 = scmp.lt.u32.totalorder %s3771_s12, %s4192_s10 }
  0x57   : > { %p3774_p5 = pnand %p3772_p4, %p4155_p12  ;;  %p3779_p11 = por %p3778_p9, %p3777_p8 }
  0x59   : > { %p3775_p6 = pneg %p3774_p5  ;;  %p3781_p1 = por %p3780_p13, %p3779_p11 }
  0x5b   : > { %p3782_p2 = pnand %p3781_p1, %p3775_p6 }
  0x5d   : > { %3785 = shalt.err (!%p3782_p2)
}
  0x5e   : > { %s3786_s30 = scalar_lea.vmem %s4195_s8, 2048  ;;  %s3970_s28 = smov [#allocation8]  }
  0x5f   : > { %p3787_p7 = scmp.ne.s32.totalorder %s4195_s8, %s3786_s30  ;;  %s3791_s3 = sshll.u32 %s3970_s28, 4  ;;  %s3792_s3 = int_to_ptr.vmem [resolvable:$false] %s3791_s3 }
  0x60   : > { %s3793_s2 = scalar_lea.vmem %s3792_s3, 4096  ;;  %p3794_p5 = scmp.lt.s32.totalorder %s4195_s8, %s3792_s3 }
  0x61   : > { %p3789_p0 = pnand %p3787_p7, %p4155_p12  ;;  %p3795_p3 = scmp.lt.s32.totalorder %s3793_s2, %s3786_s30 }
  0x63   : > { %p3790_p4 = pneg %p3789_p0  ;;  %p3796_p8 = por %p3795_p3, %p3794_p5 }
  0x65   : > { %p3797_p9 = pnand %p3796_p8, %p3790_p4 }
  0x67   : > { %3800 = shalt.err (!%p3797_p9)
}
  0x68   : > { %s4890_s20 = smov 8   ;;  %s4891_s12 = smov 128  }
  0x69   : > { %3636 = dma.hbm_to_vmem [thread:$0]  (!%p4123_p10), %s4192_s10, 2048, %s4195_s8, %s4199_s5, %s4891_s12, %s4891_s12, %s4890_s20  }
  0x6a   : > { %s2820_s27 = sshll.u32 %s4121_s15, 8  ;;  %s2821_s4 = sshll.u32 %s3957_s23, 5 }
  0x6b   : > { %s2822_s30 = sshll.u32 %s3961_s24, 7  ;;  %s560_s28 = scalar_lea.vmem [#allocation3], %s2820_s27 }
  0x6c   : > { %s569_s3 = sshll.u32 %s560_s28, 4  ;;  %s566_s2 = sadd.s32 %s2822_s30, %s2821_s4  ;;  %s4229_s3 = int_to_ptr.vmem [resolvable:$true] %s569_s3 }
  0x6d   : > { %s2823_s11 = sshll.u32 %s566_s2, 7  ;;  %s4892_s6 = sld [smem:[#allocation33_spill]] }
  0x6e   : > { %s557_s22 = scalar_lea.sflag [#allocation4], %s4121_s15 }
  0x73   : > { %s4234_s21 = scalar_lea.hbm %s4892_s6, %s2823_s11  ;;  %s3806_s4 = scalar_lea.hbm %s4892_s6, 32768 }
  0x74   : > { %s3801_s8 = scalar_lea.hbm %s4234_s21, 4096  ;;  %p3807_p13 = scmp.lt.u32.totalorder %s4234_s21, %s4892_s6 }
  0x75   : > { %p3802_p3 = scmp.ne.s32.totalorder %s4234_s21, %s3801_s8  ;;  %p3808_p1 = scmp.lt.u32.totalorder %s3806_s4, %s3801_s8 }
  0x76   : > { %p3810_p7 = scmp.lt.u32.totalorder %s3801_s8, %s4234_s21 }
  0x77   : > { %p3804_p6 = pnand %p3802_p3, %p4155_p12  ;;  %p3809_p2 = por %p3808_p1, %p3807_p13 }
  0x79   : > { %p3805_p11 = pneg %p3804_p6  ;;  %p3811_p0 = por %p3810_p7, %p3809_p2 }
  0x7b   : > { %p3812_p4 = pnand %p3811_p0, %p3805_p11 }
  0x7d   : > { %3815 = shalt.err (!%p3812_p4)
}
  0x7e   : > { %s3816_s0 = scalar_lea.vmem %s4229_s3, 4096  ;;  %s3971_s1 = smov [#allocation3]  }
  0x7f   : > { %p3817_p5 = scmp.ne.s32.totalorder %s4229_s3, %s3816_s0  ;;  %s3821_s11 = sshll.u32 %s3971_s1, 4  ;;  %s3822_s11 = int_to_ptr.vmem [resolvable:$false] %s3821_s11 }
  0x80   : > { %s3823_s2 = scalar_lea.vmem %s3822_s11, 8192  ;;  %p3824_p3 = scmp.lt.s32.totalorder %s4229_s3, %s3822_s11 }
  0x81   : > { %p3819_p8 = pnand %p3817_p5, %p4155_p12  ;;  %p3825_p6 = scmp.lt.s32.totalorder %s3823_s2, %s3816_s0 }
  0x83   : > { %p3820_p9 = pneg %p3819_p8  ;;  %p3826_p13 = por %p3825_p6, %p3824_p3 }
  0x85   : > { %p3827_p1 = pnand %p3826_p13, %p3820_p9 }
  0x87   : > { %3830 = shalt.err (!%p3827_p1)
}
  0x88   : > { %s3972_s8 = smov 256   ;;  %s3973_s10 = smov 16  }
  0x89   : > { %3627 = dma.hbm_to_vmem [thread:$0]  (!%p4123_p10), %s4234_s21, 4096, %s4229_s3, %s557_s22, %s3972_s8, %s3972_s8, %s3973_s10  }
  0x8a   : > { %s4893_s9 = sld [smem:[#allocation36_spill]]  ;;  %s618_s28 = scalar_lea.vmem [#allocation7], %s4129_s14 }
  0x8b   : > { %s627_s0 = sshll.u32 %s618_s28, 4  ;;  %s4894_s13 = sld [smem:[#allocation40_spill]]  ;;  %s4267_s0 = int_to_ptr.vmem [resolvable:$true] %s627_s0 }
  0x90   : > { %s4264_s30 = scalar_lea.hbm %s4893_s9, %s4139_s17  ;;  %s3836_s3 = scalar_lea.hbm %s4893_s9, 16384 }
  0x91   : > { %s4273_s2 = scalar_lea.hbm %s4894_s13, %s4139_s17  ;;  %s3831_s15 = scalar_lea.hbm %s4264_s30, 2048 }
  0x92   : > { %p3832_p11 = scmp.ne.s32.totalorder %s4264_s30, %s3831_s15  ;;  %p3837_p0 = scmp.lt.u32.totalorder %s4264_s30, %s4893_s9 }
  0x93   : > { %p3838_p4 = scmp.lt.u32.totalorder %s3836_s3, %s3831_s15  ;;  %p3840_p8 = scmp.lt.u32.totalorder %s3831_s15, %s4264_s30 }
  0x94   : > { %p3834_p2 = pnand %p3832_p11, %p4155_p12 }
  0x95   : > { %p3839_p5 = por %p3838_p4, %p3837_p0 }
  0x96   : > { %p3835_p7 = pneg %p3834_p2 }
  0x97   : > { %p3841_p9 = por %p3840_p8, %p3839_p5 }
  0x99   : > { %p3842_p3 = pnand %p3841_p9, %p3835_p7 }
  0x9b   : > { %3845 = shalt.err (!%p3842_p3)
}
  0x9c   : > { %s3846_s17 = scalar_lea.vmem %s4267_s0, 2048  ;;  %s3974_s27 = smov [#allocation7]  }
  0x9d   : > { %p3847_p6 = scmp.ne.s32.totalorder %s4267_s0, %s3846_s17  ;;  %s3851_s4 = sshll.u32 %s3974_s27, 4  ;;  %s3852_s4 = int_to_ptr.vmem [resolvable:$false] %s3851_s4 }
  0x9e   : > { %s3853_s28 = scalar_lea.vmem %s3852_s4, 4096  ;;  %p3854_p11 = scmp.lt.s32.totalorder %s4267_s0, %s3852_s4 }
  0x9f   : > { %p3849_p13 = pnand %p3847_p6, %p4155_p12  ;;  %p3855_p2 = scmp.lt.s32.totalorder %s3853_s28, %s3846_s17 }
  0xa1   : > { %p3850_p1 = pneg %p3849_p13  ;;  %p3856_p0 = por %p3855_p2, %p3854_p11 }
  0xa3   : > { %p3857_p4 = pnand %p3856_p0, %p3850_p1 }
  0xa5   : > { %3860 = shalt.err (!%p3857_p4)
}
  0xa6   : > { %3633 = dma.hbm_to_vmem [thread:$0]  (!%p4123_p10), %s4264_s30, 2048, %s4267_s0, %s4149_s29, %s4891_s12, %s4891_s12, %s4890_s20  }
  0xa7   : > { %s684_s1 = scalar_lea.vmem [#allocation10], %s4129_s14  ;;  %s3861_s15 = scalar_lea.hbm %s4273_s2, 2048 }
  0xa8   : > { %s693_s11 = sshll.u32 %s684_s1, 4  ;;  %p3862_p7 = scmp.ne.s32.totalorder %s4273_s2, %s3861_s15  ;;  %s4301_s11 = int_to_ptr.vmem [resolvable:$true] %s693_s11 }
  0xa9   : > { %s3866_s3 = scalar_lea.hbm %s4894_s13, 16384  ;;  %p3867_p9 = scmp.lt.u32.totalorder %s4273_s2, %s4894_s13 }
  0xaa   : > { %p3864_p5 = pnand %p3862_p7, %p4155_p12  ;;  %p3868_p3 = scmp.lt.u32.totalorder %s3866_s3, %s3861_s15 }
  0xab   : > { %p3870_p13 = scmp.lt.u32.totalorder %s3861_s15, %s4273_s2 }
  0xac   : > { %p3865_p8 = pneg %p3864_p5  ;;  %p3869_p6 = por %p3868_p3, %p3867_p9 }
  0xae   : > { %p3871_p1 = por %p3870_p13, %p3869_p6 }
  0xb0   : > { %p3872_p11 = pnand %p3871_p1, %p3865_p8 }
  0xb2   : > { %3875 = shalt.err (!%p3872_p11)
}
  0xb3   : > { %s3876_s14 = scalar_lea.vmem %s4301_s11, 2048  ;;  %s3975_s29 = smov [#allocation10]  }
  0xb4   : > { %p3877_p2 = scmp.ne.s32.totalorder %s4301_s11, %s3876_s14  ;;  %s3881_s30 = sshll.u32 %s3975_s29, 4  ;;  %s3882_s30 = int_to_ptr.vmem [resolvable:$false] %s3881_s30 }
  0xb5   : > { %s3883_s0 = scalar_lea.vmem %s3882_s30, 4096  ;;  %p3884_p7 = scmp.lt.s32.totalorder %s4301_s11, %s3882_s30 }
  0xb6   : > { %p3879_p0 = pnand %p3877_p2, %p4155_p12  ;;  %p3885_p5 = scmp.lt.s32.totalorder %s3883_s0, %s3876_s14 }
  0xb8   : > { %p3880_p4 = pneg %p3879_p0  ;;  %p3886_p9 = por %p3885_p5, %p3884_p7 }
  0xba   : > { %p3887_p3 = pnand %p3886_p9, %p3880_p4 }
  0xbc   : > { %3890 = shalt.err (!%p3887_p3)
}
  0xbd   : > { %3639 = dma.hbm_to_vmem [thread:$0]  (!%p4123_p10), %s4273_s2, 2048, %s4301_s11, %s4199_s5, %s4891_s12, %s4891_s12, %s4890_s20  }
  0xbe   : > { %p4895_p12 = scmp.ne.s32.totalorder %s4887_s26, 0 }
  0xc0   : > { %715 = sbr.rel (%p4895_p12) target bundleno = 1825 (0x721), region = 80 }
  0xc7   : > { %s717_s7 = sand.u32 1, %s3941_s19   ;;  %p4897_p8 = scmp.ne.s32.totalorder %s4882_s16, 0 }
  0xc8   : > { %s2841_s17 = sshll.u32 %s717_s7, 8  ;;  %s718_s27 = scalar_lea.sflag [#allocation4], %s717_s7 }
  0xc9   : > { %s4331_s4 = scalar_lea.vmem [#allocation3], %s2841_s17 }
  0xca   : > { %4896 = sst [smem:[#allocation24_spill]] %s4331_s4 }
  0xcb   : > { %3924 = dma.done.wait (%p4897_p8), %s718_s27, 4096  }
  0xcc   : > { %3926 = vsyncadd (%p4897_p8), %s718_s27, 4294963200  ;;  %s4898_s18 = sadd.s32 4294967295, %s3965_s25   ;;  %s4339_s5 = sshll.u32 %s717_s7, 7 }
  0xcd   : > { %s726_s28 = sand.u32 1, %s4898_s18   ;;  %s4342_s20 = scalar_lea.vmem [#allocation5], %s4339_s5 }
  0xce   : > { %s727_s26 = scalar_lea.sflag [#allocation6], %s726_s28 }
  0xcf   : > { %3928 = dma.done.wait (%p4897_p8), %s727_s26, 4096  }
  0xd0   : > { %3930 = vsyncadd (%p4897_p8), %s727_s26, 4294963200  ;;  %s4349_s12 = scalar_lea.vmem [#allocation7], %s4339_s5  ;;  %s745_s2 = scalar_lea.sflag [#allocation9], %s726_s28 }
  0xd1   : > { %4899 = sst [smem:[#allocation25_spill]] %s4349_s12  ;;  %s4352_s1 = scalar_lea.vmem [#allocation8], %s4339_s5 }
  0xd2   : > { %4900 = sst [smem:[#allocation26_spill]] %s4352_s1 }
  0xd3   : > { %3932 = dma.done.wait (%p4897_p8), %s745_s2, 4096  }
  0xd4   : > { %3934 = vsyncadd (%p4897_p8), %s745_s2, 4294963200  ;;  %s4901_s11 = sld [smem:[#allocation17_spill]]  ;;  %s4902_s15 = sld [smem:[#allocation16_spill]] }
  0xd5   : > { %s4903_s14 = sld [smem:[#allocation27_spill]]  ;;  %s4904_s7 = sld [smem:[#allocation28_spill]] }
  0xd6   : > { %s4905_s18 = sld [smem:[#allocation29_spill]]  ;;  %s4906_s24 = sld [smem:[#allocation30_spill]] }
  0xd7   : > { %s4908_s13 = sld [smem:[#allocation32_spill]]  ;;  %s4909_s1 = sld [smem:[#allocation34_spill]] }
  0xd8   : > { %s4910_s4 = sld [smem:[#allocation37_spill]]  ;;  %s4416_s25 = scalar_lea.vmem [#allocation10], %s4339_s5 }
  0xda   : > { %p890_p10 = scmp.lt.s32.totalorder %s4901_s11, 1  ;;  %p912_p6 = scmp.lt.s32.totalorder %s4902_s15, 3 }
  0xdb   : > { %p2865_p13 = scmp.ne.s32.totalorder %s4902_s15, 0 }
  0xdc   : > { %s4938_s11 = smov (!%p890_p10, %s4901_s11), 1 }
  0xdd   : > { %s913_s21 = scalar_select %p912_p6, %s4902_s15, 3 }
  0xde   : > { %s2898_s22 = sshll.u32 %s4938_s11, 6  ;;  %s2900_s3 = sshll.u32 %s4938_s11, 4 }
  0xdf   : > { %s4365_s29 = scalar_lea.vmem %s4903_s14, %s2898_s22  ;;  %s4370_s16 = scalar_lea.vmem %s4904_s7, %s2898_s22 }
  0xe0   : > { %s4375_s28 = scalar_lea.vmem %s4905_s18, %s2900_s3  ;;  %s3613_s26 = smul.u32 192, %s4938_s11  ;;  %v965_v0 = vld [vmem:[%s4365_s29] sm:$0xff] (!%p2865_p13)  ;;  %v966_v1 = vld [vmem:[%s4365_s29 + $0x8] sm:$0xff] (!%p2865_p13)  ;;  %v967_v2 = vld [vmem:[%s4365_s29 + $0x10] sm:$0xff] (!%p2865_p13) }
  0xe1   : > { %s2853_s2 = sshll.u32 %s4938_s11, 2  ;;  %s2854_s6 = sshll.u32 %s913_s21, 5  ;;  %973 = vst [vmem:[#allocation2] sm:$0xff] (!%p2865_p13), %v965_v0  ;;  %974 = vst [vmem:[#allocation2 + $0x8] sm:$0xff] (!%p2865_p13), %v966_v1  ;;  %v968_v3 = vld [vmem:[%s4365_s29 + $0x18] sm:$0xff] (!%p2865_p13)  ;;  %v969_v4 = vld [vmem:[%s4365_s29 + $0x20] sm:$0xff] (!%p2865_p13) }
  0xe2   : > { %s4380_s8 = scalar_lea.vmem %s4906_s24, %s3613_s26  ;;  %s4382_s10 = sadd.s32 %s2853_s2, %s913_s21  ;;  %975 = vst [vmem:[#allocation2 + $0x10] sm:$0xff] (!%p2865_p13), %v967_v2  ;;  %v970_v5 = vld [vmem:[%s4365_s29 + $0x28] sm:$0xff] (!%p2865_p13)  ;;  %976 = vst [vmem:[#allocation2 + $0x18] sm:$0xff] (!%p2865_p13), %v968_v3  ;;  %v971_v6 = vld [vmem:[%s4365_s29 + $0x30] sm:$0xff] (!%p2865_p13) }
  0xe3   : > { %s2855_s7 = sshll.u32 %s4938_s11, 7  ;;  %s2857_s27 = sshll.u32 %s913_s21, 4  ;;  %977 = vst [vmem:[#allocation2 + $0x20] sm:$0xff] (!%p2865_p13), %v969_v4  ;;  %978 = vst [vmem:[#allocation2 + $0x28] sm:$0xff] (!%p2865_p13), %v970_v5  ;;  %v972_v7 = vld [vmem:[%s4365_s29 + $0x38] sm:$0xff] (!%p2865_p13) }
  0xe4   : > { %s923_s17 = sadd.s32 %s2855_s7, %s2854_s6  ;;  %s932_s23 = sadd.s32 %s2898_s22, %s2857_s27  ;;  %979 = vst [vmem:[#allocation2 + $0x30] sm:$0xff] (!%p2865_p13), %v971_v6  ;;  %980 = vst [vmem:[#allocation2 + $0x38] sm:$0xff] (!%p2865_p13), %v972_v7 }
  0xe5   : > { %s2856_s18 = sshll.u32 %s923_s17, 3  ;;  %s2859_s26 = sshll.u32 %s932_s23, 3 }
  0xe6   : > { %s4391_s24 = scalar_lea.vmem %s4908_s13, %s2856_s18  ;;  %s4396_s12 = scalar_lea.vmem %s4909_s1, %s2859_s26 }
  0xe7   : > { %s941_s0 = scalar_lea.vmem %s4910_s4, %s4382_s10  ;;  %s4911_s21 = sld [smem:[#allocation39_spill]] }
  0xe8   : > { %s4912_s3 = sld [smem:[#allocation41_spill]]  ;;  %s4913_s23 = sld [smem:[#allocation42_spill]] }
  0xe9   : > { %964 = sbr.rel (%p2865_p13) target bundleno = 240 (0xf0), region = 104 }
  0xed   : > { %s948_s7 = scalar_lea.vmem %s4911_s21, %s4382_s10 }
  0xee   : > { %s955_s19 = scalar_lea.vmem %s4912_s3, %s4382_s10  ;;  %s4413_s13 = scalar_lea.vmem %s4913_s23, %s2898_s22 }
  0xf0 PF: > { %v999_v8 = vld [vmem:[%s4370_s16 + $0x10] sm:$0xff]  ;;  %v997_v9 = vld [vmem:[%s4370_s16] sm:$0xff]  ;;  %v3976_v10 = vmov 0   ;;  %v1000_v11 = vld [vmem:[%s4370_s16 + $0x18] sm:$0xff]  ;;  %vm1085_vm0 = vcmask 523264   ;;  %vm1221_vm1 = vcmask 130048   ;;  %v1184_v59 = vlaneseq }
  0xf1   : > { %3712 = vset.pattern.permute.xlu1 %v3976_v10  ;;  %3711 = vset.pattern.permute.xlu0 %v3976_v10  ;;  %v998_v12 = vld [vmem:[%s4370_s16 + $0x8] sm:$0xff]  ;;  %v1001_v14 = vld [vmem:[%s4370_s16 + $0x20] sm:$0xff]  ;;  %v1004_v15 = vld [vmem:[%s4370_s16 + $0x38] sm:$0xff]  ;;  %s4914_s1 = sld [smem:[#allocation31_spill]]  ;;  %s4917_s22 = sld [smem:[#allocation25_spill]] }
  0xf2   : > { %1017 = vperm.xlu1 %3712, %v999_v8   ;;  %1007 = vperm.xlu0 %3711, %v997_v9   ;;  %v1002_v13 = vld [vmem:[%s4370_s16 + $0x28] sm:$0xff]  ;;  %v1003_v16 = vld [vmem:[%s4370_s16 + $0x30] sm:$0xff]  ;;  %v1167_v17 = vld [vmem:[%s4375_s28] sm:$0xff]  ;;  %v1185_v60 = vshrl.u32 %v1184_v59, 7 }
  0xf3   : > { %v1169_v18 = vsub.f32 0.0, %v1167_v17  ;;  %v1168_v19 = vld [vmem:[%s4375_s28 + $0x8] sm:$0xff]  ;;  %v989_v21 = vld [vmem:[%s4380_s8] sm:$0xff]  ;;  %v4443_v23 = vld [vmem:[%s4380_s8 + $0x10] sm:$0xff] }
  0xf4   : > { %v1170_v20 = vsub.f32 0.0, %v1168_v19  ;;  %v4439_v22 = vld [vmem:[%s4380_s8 + $0x8] sm:$0xff]  ;;  %v4447_v24 = vld [vmem:[%s4380_s8 + $0x18] sm:$0xff]  ;;  %v4451_v25 = vld [vmem:[%s4380_s8 + $0x20] sm:$0xff]  ;;  %v1186_v0 = vsub.s32 0, %v1185_v60 }
  0xf5   : > { %v4455_v26 = vld [vmem:[%s4380_s8 + $0x28] sm:$0xff]  ;;  %v4459_v27 = vld [vmem:[%s4380_s8 + $0x30] sm:$0xff]  ;;  %v4463_v28 = vld [vmem:[%s4380_s8 + $0x38] sm:$0xff] }
  0xf6   : > { %1022 = vperm.xlu1 %3712, %v1000_v11   ;;  %1012 = vperm.xlu0 %3711, %v998_v12   ;;  %v4466_v30 = vld [vmem:[#allocation2 + $0x10] sm:$0xff]  ;;  %v4468_v32 = vld [vmem:[#allocation2] sm:$0xff]  ;;  %v4470_v33 = vld [vmem:[#allocation2 + $0x18] sm:$0xff] }
  0xf7   : > { %v4472_v34 = vld [vmem:[#allocation2 + $0x8] sm:$0xff]  ;;  %v4480_v42 = vld [vmem:[#allocation2 + $0x20] sm:$0xff]  ;;  %v4484_v49 = vld [vmem:[#allocation2 + $0x38] sm:$0xff]  ;;  %s4915_s15 = scalar_lea.vmem %s4914_s1, %s4382_s10  ;;  %s4922_s10 = sld [smem:[#allocation16_spill]] }
  0xf8   : > { %v4478_v41 = vld [vmem:[#allocation2 + $0x28] sm:$0xff]  ;;  %v4486_v50 = vld [vmem:[#allocation2 + $0x30] sm:$0xff]  ;;  %v1171_v61 = vld [vmem:[%s4915_s15] sm:$0x1] }
  0xf9   : > { %v1172_v63 = vand.u32 2147483647, %v1171_v61  ;;  %v1817_v12 = vld [vmem:[%s4342_s20] sm:$0xff]  ;;  %v1819_v17 = vld [vmem:[%s4342_s20 + $0x10] sm:$0xff]  ;;  %v1218_v59 = vld [vmem:[%s4380_s8 + $0xa8] sm:$0xff] }
  0xfa   : > { %1032 = vperm.xlu1 %3712, %v1002_v13   ;;  %1027 = vperm.xlu0 %3711, %v1001_v14   ;;  %v1818_v13 = vld [vmem:[%s4342_s20 + $0x8] sm:$0xff]  ;;  %v1219_v60 = vld [vmem:[%s4380_s8 + $0xb0] sm:$0xff]  ;;  %v1220_v61 = vld [vmem:[%s4380_s8 + $0xb8] sm:$0xff] }
  0xfb   : > { %v1187_v1 = vrot.slane %v1172_v63, %v1186_v0 }
  0xfd   : > { %p2895_p1 = scmp.ne.s32.totalorder %s4922_s10, 3 }
  0xfe   : > { %1042 = vperm.xlu1 %3712, %v1004_v15   ;;  %1037 = vperm.xlu0 %3711, %v1003_v16   ;;  %v3421_v16 = vpack.c.bf16 %v1818_v13, %v1817_v12 }
 0x102   : > { %1175 = vperm.xlu1 %3712, %v1169_v18   ;;  %v1820_v18 = vld [vmem:[%s4342_s20 + $0x18] sm:$0xff] }
 0x103   : > { %v3425_v19 = vpack.c.bf16 %v1820_v18, %v1819_v17 }
 0x106   : > { %1180 = vperm.xlu1 %3712, %v1170_v20   ;;  %v1821_v20 = vld [vmem:[%s4342_s20 + $0x20] sm:$0xff] }
 0x11c   : > { %1053 = vxpose.xlu0.b32.start [1/8] (short) (narrow) %v989_v21, 16 }
 0x120   : > { %1054 = vxpose.xlu0.b32.cont [2/8] (short) (narrow) %v4439_v22, 16 }
 0x124   : > { %1055 = vxpose.xlu0.b32.cont [3/8] (short) (narrow) %v4443_v23, 16 }
 0x128   : > { %1056 = vxpose.xlu0.b32.cont [4/8] (short) (narrow) %v4447_v24, 16 }
 0x12c   : > { %1057 = vxpose.xlu0.b32.cont [5/8] (short) (narrow) %v4451_v25, 16 }
 0x130   : > { %1058 = vxpose.xlu0.b32.cont [6/8] (short) (narrow) %v4455_v26, 16 }
 0x134   : > { %1059 = vxpose.xlu0.b32.cont [7/8] (short) (narrow) %v4459_v27, 16 }
 0x138   : > { %1060 = vxpose.xlu0.b32.end [8/8] (short) (narrow) %v4463_v28, 16 }
 0x171   : > { %v1018_v29 = vpop.permute.xlu1 %1017  ;;  %v1008_v31 = vpop.permute.xlu0 %1007 }
 0x172   : > { %v1047_v35 = vmul.f32 %v1018_v29, %v4466_v30  ;;  %v1045_v38 = vmul.f32 %v1008_v31, %v4468_v32  ;;  %v1823_v31 = vld [vmem:[%s4342_s20 + $0x30] sm:$0xff] }
 0x175   : > { %v1023_v36 = vpop.permute.xlu1 %1022  ;;  %v1013_v37 = vpop.permute.xlu0 %1012 }
 0x176   : > { %v1048_v39 = vmul.f32 %v1023_v36, %v4470_v33  ;;  %v1046_v40 = vmul.f32 %v1013_v37, %v4472_v34  ;;  %v1826_v36 = vld [vmem:[%s4342_s20 + $0x48] sm:$0xff]  ;;  %v1827_v37 = vld [vmem:[%s4342_s20 + $0x50] sm:$0xff] }
 0x178   : > { %v3341_v43 = vpack.c.bf16 %v1048_v39, %v1047_v35  ;;  %v3337_v44 = vpack.c.bf16 %v1046_v40, %v1045_v38  ;;  %v1824_v35 = vld [vmem:[%s4342_s20 + $0x38] sm:$0xff]  ;;  %v1207_v39 = vld [vmem:[%s4380_s8 + $0x50] sm:$0xff]  ;;  %v1829_v40 = vld [vmem:[%s4342_s20 + $0x60] sm:$0xff] }
 0x179   : > { %v1033_v45 = vpop.permute.xlu1 %1032  ;;  %v1028_v46 = vpop.permute.xlu0 %1027  ;;  %v1828_v38 = vld [vmem:[%s4342_s20 + $0x58] sm:$0xff] }
 0x17a   : > { %v1050_v47 = vmul.f32 %v1033_v45, %v4478_v41  ;;  %v1049_v48 = vmul.f32 %v1028_v46, %v4480_v42  ;;  %3338 = vmatprep.subr.bf16.mxu1 %v3337_v44  ;;  %v1831_v46 = vld [vmem:[%s4342_s20 + $0x70] sm:$0xff] }
 0x17b   : > { %3340 = vmatpush3.bf16.msra.mxu1 %v3337_v44  ;;  %v1208_v44 = vld [vmem:[%s4380_s8 + $0x58] sm:$0xff] }
 0x17c   : > { %3342 = vmatprep.subr.bf16.mxu1 %v3341_v43  ;;  %v3345_v53 = vpack.c.bf16 %v1050_v47, %v1049_v48  ;;  %v1832_v47 = vld [vmem:[%s4342_s20 + $0x78] sm:$0xff]  ;;  %v1210_v48 = vld [vmem:[%s4380_s8 + $0x68] sm:$0xff] }
 0x17d   : > { %v1043_v51 = vpop.permute.xlu1 %1042  ;;  %v1038_v52 = vpop.permute.xlu0 %1037 }
 0x17e   : > { %v1052_v54 = vmul.f32 %v1043_v51, %v4484_v49  ;;  %v1051_v55 = vmul.f32 %v1038_v52, %v4486_v50  ;;  %v1211_v51 = vld [vmem:[%s4380_s8 + $0x70] sm:$0xff]  ;;  %v3449_v52 = vpack.c.bf16 %v1832_v47, %v1831_v46 }
 0x17f   : > { %3344 = vmatpush3.bf16.msra.mxu1 %v3341_v43  ;;  %v1830_v43 = vld [vmem:[%s4342_s20 + $0x68] sm:$0xff] }
 0x180   : > { %3346 = vmatprep.subr.bf16.mxu1 %v3345_v53  ;;  %v3349_v56 = vpack.c.bf16 %v1052_v54, %v1051_v55  ;;  %v3445_v45 = vpack.c.bf16 %v1830_v43, %v1829_v40  ;;  %v1213_v54 = vld [vmem:[%s4380_s8 + $0x80] sm:$0xff]  ;;  %v1214_v55 = vld [vmem:[%s4380_s8 + $0x88] sm:$0xff] }
 0x181   : > { %v1176_v62 = vpop.permute.xlu1 %1175 }
 0x182   : > { %v1189_v4 = vmul.f32 %v1187_v1, %v1176_v62 }
 0x183   : > { %3348 = vmatpush3.bf16.msra.mxu1 %v3345_v53  ;;  %v1212_v53 = vld [vmem:[%s4380_s8 + $0x78] sm:$0xff] }
 0x184   : > { %3350 = vmatprep.subr.bf16.mxu1 %v3349_v56  ;;  %v1191_v6 = vmul.f32 1.442695, %v1189_v4 }
 0x185   : > { %v1181_v2 = vpop.permute.xlu1 %1180 }
 0x186   : > { %v1190_v3 = vmul.f32 %v1187_v1, %v1181_v2 }
 0x187   : > { %3352 = vmatpush3.bf16.msra.mxu1 %v3349_v56  ;;  %v1215_v56 = vld [vmem:[%s4380_s8 + $0x90] sm:$0xff] }
 0x188   : > { %v1193_v5 = vmul.f32 1.442695, %v1190_v3 }
 0x18a   : > { %3713 = vpow2.f32 %v1193_v5 }
 0x18b   : > { %3715 = vpow2.f32 %v1191_v6 }
 0x194   : > { %v3714_v7 = vpop.eup %3713 }
 0x195   : > { %v3716_v9 = vpop.eup %3715 }
 0x19c   : > { %v1069_v57 = vpop.trf.xlu0 }
 0x19d   : > { %3074 = vmatprep.mubr.msk.f32.mxu1 %vm1085_vm0, %v1069_v57  ;;  %v1216_v57 = vld [vmem:[%s4380_s8 + $0x98] sm:$0xff] }
 0x1a0   : > { %v1070_v58 = vpop.trf.xlu0 }
 0x1a1   : > { %3075 = vmatmul.mubr.msk.f32.vlgmr.msra.gmra.mrb[0].mxu1 %vm1085_vm0, %v1070_v58  ;;  %v1217_v58 = vld [vmem:[%s4380_s8 + $0xa0] sm:$0xff] }
 0x1a2   : > { %3081 = vmatprep.mubr.msk.f32.mxu1 %vm1221_vm1, %v989_v21  ;;  %v1822_v21 = vld [vmem:[%s4342_s20 + $0x28] sm:$0xff] }
 0x1a3   : > { %v3429_v29 = vpack.c.bf16 %v1822_v21, %v1821_v20 }
 0x274   : > { %v3076_v8 = vpop.f32.mrb[0].mxu1 }
 0x275   : > { %v1196_v10 = vmul.f32 %v3714_v7, %v3076_v8  ;;  %v1158_v11 = vpop.f32.mrb[1].mxu1 }
 0x276   : > { %v1195_v14 = vmul.f32 %v3716_v9, %v1158_v11 }
 0x278   : > { %v3353_v15 = vpack.c.bf16 %v1196_v10, %v1195_v14 }
 0x27a   : > { %3354 = vmatprep.subr.bf16.mxu1 %v3353_v15 }
 0x27b   : > { %3356 = vmatpush3.bf16.msra.mxu1 %v3353_v15 }
 0x27c   : > { %3422 = vmatprep.subr.bf16.mxu1 %v3421_v16 }
 0x27e   : > { %3082 = vmatmul.mubr.msk.f32.vlgmr.msra.gmra.mrb[2].mxu1 %vm1221_vm1, %v4439_v22  ;;  %v3433_v22 = vpack.c.bf16 %v1824_v35, %v1823_v31 }
 0x27f   : > { %3084 = vmatprep.mubr.msk.f32.mxu1 %vm1221_vm1, %v4443_v23  ;;  %3424 = vmatpush3.bf16.msra.mxu1 %v3421_v16  ;;  %v1825_v23 = vld [vmem:[%s4342_s20 + $0x40] sm:$0xff]  ;;  %s4916_s20 = sld [smem:[#allocation24_spill]] }
 0x280   : > { %3426 = vmatprep.subr.bf16.mxu1 %v3425_v19 }
 0x282   : > { %3085 = vmatmul.mubr.msk.f32.gmra.mrb[4].mxu1 %vm1221_vm1, %v4447_v24  ;;  %v1205_v24 = vld [vmem:[%s4380_s8 + $0x40] sm:$0xff] }
 0x283   : > { %3087 = vmatprep.mubr.msk.f32.mxu1 %vm1221_vm1, %v4451_v25  ;;  %3428 = vmatpush3.bf16.msra.mxu1 %v3425_v19  ;;  %v3437_v25 = vpack.c.bf16 %v1826_v36, %v1825_v23 }
 0x284   : > { %3430 = vmatprep.subr.bf16.mxu1 %v3429_v29 }
 0x285   : > { %v1512_v62 = vld [vmem:[%s4916_s20 + $0x8] sm:$0xff]  ;;  %v1514_v63 = vld [vmem:[%s4916_s20 + $0x18] sm:$0xff]  ;;  %v1511_v1 = vld [vmem:[%s4916_s20] sm:$0xff] }
 0x286   : > { %3088 = vmatmul.mubr.msk.f32.gmra.mrb[6].mxu1 %vm1221_vm1, %v4455_v26  ;;  %v1206_v26 = vld [vmem:[%s4380_s8 + $0x48] sm:$0xff]  ;;  %v3357_v0 = vpack.c.bf16 %v1514_v63, %v1512_v62  ;;  %v1513_v2 = vld [vmem:[%s4916_s20 + $0x10] sm:$0xff]  ;;  %v1518_v5 = vld [vmem:[%s4916_s20 + $0x38] sm:$0xff] }
 0x287   : > { %3090 = vmatprep.mubr.msk.f32.mxu1 %vm1221_vm1, %v4459_v27  ;;  %3432 = vmatpush3.bf16.msra.mxu1 %v3429_v29  ;;  %v3441_v27 = vpack.c.bf16 %v1828_v38, %v1827_v37  ;;  %v3359_v3 = vpack.c.bf16 %v1513_v2, %v1511_v1  ;;  %v1516_v4 = vld [vmem:[%s4916_s20 + $0x28] sm:$0xff]  ;;  %v1515_v7 = vld [vmem:[%s4916_s20 + $0x20] sm:$0xff]  ;;  %v1517_v8 = vld [vmem:[%s4916_s20 + $0x30] sm:$0xff] }
 0x288   : > { %3434 = vmatprep.subr.bf16.mxu1 %v3433_v22  ;;  %3358 = vmatprep.subr.bf16.mxu0 %v3357_v0  ;;  %v3361_v6 = vpack.c.bf16 %v1518_v5, %v1516_v4  ;;  %v3363_v9 = vpack.c.bf16 %v1517_v8, %v1515_v7  ;;  %v1520_v10 = vld [vmem:[%s4916_s20 + $0x48] sm:$0xff]  ;;  %v1522_v11 = vld [vmem:[%s4916_s20 + $0x58] sm:$0xff]  ;;  %v1519_v13 = vld [vmem:[%s4916_s20 + $0x40] sm:$0xff] }
 0x289   : > { %3360 = vmatpush1.bf16.msra.mxu0 %v3359_v3  ;;  %v3365_v12 = vpack.c.bf16 %v1522_v11, %v1520_v10  ;;  %v1521_v14 = vld [vmem:[%s4916_s20 + $0x50] sm:$0xff]  ;;  %v1524_v16 = vld [vmem:[%s4916_s20 + $0x68] sm:$0xff]  ;;  %v1526_v17 = vld [vmem:[%s4916_s20 + $0x78] sm:$0xff] }
 0x28a   : > { %3091 = vmatmul.mubr.msk.f32.gmra.mrb[8].mxu1 %vm1221_vm1, %v4463_v28  ;;  %v1209_v28 = vld [vmem:[%s4380_s8 + $0x60] sm:$0xff]  ;;  %3362 = vmatprep.subr.bf16.mxu0 %v3361_v6  ;;  %v3367_v15 = vpack.c.bf16 %v1521_v14, %v1519_v13  ;;  %v3369_v18 = vpack.c.bf16 %v1526_v17, %v1524_v16  ;;  %v1525_v20 = vld [vmem:[%s4916_s20 + $0x70] sm:$0xff]  ;;  %v1528_v29 = vld [vmem:[%s4916_s20 + $0x88] sm:$0xff] }
 0x28b   : > { %3093 = vmatprep.mubr.msk.f32.mxu1 %vm1221_vm1, %v1205_v24  ;;  %3436 = vmatpush3.bf16.msra.mxu1 %v3433_v22  ;;  %v1523_v19 = vld [vmem:[%s4916_s20 + $0x60] sm:$0xff]  ;;  %v1530_v31 = vld [vmem:[%s4916_s20 + $0x98] sm:$0xff]  ;;  %v1529_v23 = vld [vmem:[%s4916_s20 + $0x90] sm:$0xff] }
 0x28c   : > { %3438 = vmatprep.subr.bf16.mxu1 %v3437_v25  ;;  %v3371_v21 = vpack.c.bf16 %v1525_v20, %v1523_v19  ;;  %v3373_v35 = vpack.c.bf16 %v1530_v31, %v1528_v29  ;;  %v1527_v22 = vld [vmem:[%s4916_s20 + $0x80] sm:$0xff]  ;;  %v1532_v24 = vld [vmem:[%s4916_s20 + $0xa8] sm:$0xff]  ;;  %v1538_v40 = vld [vmem:[%s4916_s20 + $0xd8] sm:$0xff] }
 0x28d   : > { %3364 = vmatpush1.bf16.msra.mxu0 %v3363_v9  ;;  %v3375_v36 = vpack.c.bf16 %v1529_v23, %v1527_v22  ;;  %v1531_v38 = vld [vmem:[%s4916_s20 + $0xa0] sm:$0xff]  ;;  %v1540_v46 = vld [vmem:[%s4916_s20 + $0xe8] sm:$0xff]  ;;  %v1542_v47 = vld [vmem:[%s4916_s20 + $0xf8] sm:$0xff] }
 0x28e   : > { %3094 = vmatmul.mubr.msk.f32.gmra.mrb[10].mxu1 %vm1221_vm1, %v1206_v26  ;;  %3366 = vmatprep.subr.bf16.mxu0 %v3365_v12  ;;  %v1533_v26 = vld [vmem:[%s4916_s20 + $0xb0] sm:$0xff]  ;;  %v1804_v62 = vld [vmem:[%s4396_s12 + $0x18] sm:$0xff]  ;;  %v1805_v2 = vld [vmem:[%s4396_s12 + $0x20] sm:$0xff] }
 0x28f   : > { %3096 = vmatprep.mubr.msk.f32.mxu1 %vm1221_vm1, %v1207_v39  ;;  %3440 = vmatpush3.bf16.msra.mxu1 %v3437_v25  ;;  %v1534_v25 = vld [vmem:[%s4916_s20 + $0xb8] sm:$0xff]  ;;  %v3379_v39 = vpack.c.bf16 %v1533_v26, %v1531_v38  ;;  %v1806_v3 = vld [vmem:[%s4396_s12 + $0x28] sm:$0xff]  ;;  %v1807_v7 = vld [vmem:[%s4396_s12 + $0x30] sm:$0xff] }
 0x290   : > { %3442 = vmatprep.subr.bf16.mxu1 %v3441_v27  ;;  %v3377_v37 = vpack.c.bf16 %v1534_v25, %v1532_v24  ;;  %v3461_v6 = vpack.c.bf16 %v1806_v3, %v1805_v2  ;;  %v1808_v8 = vld [vmem:[%s4396_s12 + $0x38] sm:$0xff]  ;;  %v1809_v12 = vld [vmem:[%s4396_s12 + $0x40] sm:$0xff]  ;;  %v1810_v13 = vld [vmem:[%s4396_s12 + $0x48] sm:$0xff] }
 0x291   : > { %3368 = vmatpush1.bf16.msra.mxu0 %v3367_v15  ;;  %v3465_v11 = vpack.c.bf16 %v1808_v8, %v1807_v7  ;;  %v3469_v16 = vpack.c.bf16 %v1810_v13, %v1809_v12  ;;  %v1811_v17 = vld [vmem:[%s4396_s12 + $0x50] sm:$0xff]  ;;  %v1813_v29 = vld [vmem:[%s4396_s12 + $0x60] sm:$0xff]  ;;  %v1814_v31 = vld [vmem:[%s4396_s12 + $0x68] sm:$0xff] }
 0x292   : > { %3097 = vmatmul.mubr.msk.f32.gmra.mrb[12].mxu1 %vm1221_vm1, %v1208_v44  ;;  %3370 = vmatprep.subr.bf16.mxu0 %v3369_v18  ;;  %v1535_v44 = vld [vmem:[%s4916_s20 + $0xc0] sm:$0xff]  ;;  %v1812_v18 = vld [vmem:[%s4396_s12 + $0x58] sm:$0xff]  ;;  %v3477_v23 = vpack.c.bf16 %v1814_v31, %v1813_v29  ;;  %v2044_v26 = vld [vmem:[%s4917_s22 + $0x8] sm:$0xff] }
 0x293   : > { %3099 = vmatprep.mubr.msk.f32.mxu1 %vm1221_vm1, %v1209_v28  ;;  %3444 = vmatpush3.bf16.msra.mxu1 %v3441_v27  ;;  %v1536_v27 = vld [vmem:[%s4916_s20 + $0xc8] sm:$0xff]  ;;  %v1537_v28 = vld [vmem:[%s4916_s20 + $0xd0] sm:$0xff]  ;;  %v2043_v38 = vld [vmem:[%s4917_s22] sm:$0xff] }
 0x294   : > { %3446 = vmatprep.subr.bf16.mxu1 %v3445_v45  ;;  %v3381_v43 = vpack.c.bf16 %v1538_v40, %v1536_v27  ;;  %v1479_v27 = vld [vmem:[%s4391_s24] sm:$0xff]  ;;  %v1481_v40 = vld [vmem:[%s4391_s24 + $0x10] sm:$0xff]  ;;  %v1498_v12 = vld [vmem:[%s4391_s24 + $0x98] sm:$0xff] }
 0x295   : > { %3372 = vmatpush1.bf16.msra.mxu0 %v3371_v21  ;;  %v3473_v21 = vpack.c.bf16 %v1812_v18, %v1811_v17  ;;  %v1489_v2 = vld [vmem:[%s4391_s24 + $0x50] sm:$0xff]  ;;  %v1502_v17 = vld [vmem:[%s4391_s24 + $0xb8] sm:$0xff]  ;;  %v1499_v29 = vld [vmem:[%s4391_s24 + $0xa0] sm:$0xff] }
 0x296   : > { %3100 = vmatmul.mubr.msk.f32.gmra.mrb[14].mxu1 %vm1221_vm1, %v1210_v48  ;;  %3374 = vmatprep.subr.bf16.mxu0 %v3373_v35  ;;  %v3385_v48 = vpack.c.bf16 %v1542_v47, %v1540_v46  ;;  %v3391_v46 = vpack.c.bf16 %v1481_v40, %v1479_v27  ;;  %v2045_v47 = vld [vmem:[%s4917_s22 + $0x10] sm:$0xff]  ;;  %v1510_v27 = vld [vmem:[%s4391_s24 + $0xf8] sm:$0xff] }
 0x297   : > { %3102 = vmatprep.mubr.msk.f32.mxu1 %vm1221_vm1, %v1211_v51  ;;  %3448 = vmatpush3.bf16.msra.mxu1 %v3445_v45  ;;  %v3383_v45 = vpack.c.bf16 %v1537_v28, %v1535_v44  ;;  %v1539_v51 = vld [vmem:[%s4916_s20 + $0xe0] sm:$0xff]  ;;  %v1484_v44 = vld [vmem:[%s4391_s24 + $0x28] sm:$0xff]  ;;  %v1486_v28 = vld [vmem:[%s4391_s24 + $0x38] sm:$0xff] }
 0x298   : > { %3450 = vmatprep.subr.bf16.mxu1 %v3449_v52  ;;  %v1501_v31 = vld [vmem:[%s4391_s24 + $0xb0] sm:$0xff] }
 0x299   : > { %3376 = vmatpush1.bf16.msra.mxu0 %v3375_v36  ;;  %v1816_v36 = vld [vmem:[%s4396_s12 + $0x78] sm:$0xff] }
 0x29a   : > { %3103 = vmatmul.mubr.msk.f32.gmra.mrb[16].mxu1 %vm1221_vm1, %v1212_v53  ;;  %3378 = vmatprep.subr.bf16.mxu0 %v3377_v37 }
 0x29b   : > { %3105 = vmatprep.mubr.msk.f32.mxu1 %vm1221_vm1, %v1213_v54  ;;  %3452 = vmatpush3.bf16.msra.mxu1 %v3449_v52  ;;  %v1541_v52 = vld [vmem:[%s4916_s20 + $0xf0] sm:$0xff]  ;;  %v1480_v54 = vld [vmem:[%s4391_s24 + $0x8] sm:$0xff] }
 0x29c   : > { %v3387_v53 = vpack.c.bf16 %v1541_v52, %v1539_v51  ;;  %v3393_v52 = vpack.c.bf16 %v1486_v28, %v1484_v44  ;;  %v1507_v44 = vld [vmem:[%s4391_s24 + $0xe0] sm:$0xff]  ;;  %v1509_v28 = vld [vmem:[%s4391_s24 + $0xf0] sm:$0xff] }
 0x29d   : > { %3380 = vmatpush1.bf16.msra.mxu0 %v3379_v39 }
 0x29e   : > { %3106 = vmatmul.mubr.msk.f32.gmra.mrb[18].mxu1 %vm1221_vm1, %v1214_v55  ;;  %3382 = vmatprep.subr.bf16.mxu0 %v3381_v43  ;;  %v1482_v55 = vld [vmem:[%s4391_s24 + $0x18] sm:$0xff] }
 0x29f   : > { %3108 = vmatprep.mubr.msk.f32.mxu1 %vm1221_vm1, %v1215_v56  ;;  %v3389_v56 = vpack.c.bf16 %v1482_v55, %v1480_v54  ;;  %v1485_v54 = vld [vmem:[%s4391_s24 + $0x30] sm:$0xff] }
 0x2a1   : > { %3384 = vmatpush1.bf16.msra.mxu0 %v3383_v45  ;;  %v3485_v45 = vpack.c.bf16 %v2044_v26, %v2043_v38  ;;  %v1505_v38 = vld [vmem:[%s4391_s24 + $0xd0] sm:$0xff]  ;;  %v1508_v26 = vld [vmem:[%s4391_s24 + $0xe8] sm:$0xff] }
 0x2a2   : > { %3109 = vmatmul.mubr.msk.f32.gmra.mrb[20].mxu1 %vm1221_vm1, %v1216_v57  ;;  %3386 = vmatprep.subr.bf16.mxu0 %v3385_v48  ;;  %v3977_v57 = vmov 0.0   ;;  %v2046_v48 = vld [vmem:[%s4917_s22 + $0x18] sm:$0xff]  ;;  %v3417_v40 = vpack.c.bf16 %v1510_v27, %v1508_v26 }
 0x2a3   : > { %3111 = vmatprep.mubr.msk.f32.mxu1 %vm1221_vm1, %v1217_v58  ;;  %1607 = vmatprep.mubr.f32.mxu0 %v3977_v57  ;;  %v1801_v58 = vld [vmem:[%s4396_s12] sm:$0xff] }
 0x2a5   : > { %3388 = vmatpush1.bf16.msra.mxu0 %v3387_v53  ;;  %v1483_v53 = vld [vmem:[%s4391_s24 + $0x20] sm:$0xff] }
 0x2a6   : > { %3112 = vmatmul.mubr.msk.f32.gmra.mrb[22].mxu1 %vm1221_vm1, %v1218_v59  ;;  %3390 = vmatprep.subr.bf16.mxu0 %v3389_v56  ;;  %v1802_v59 = vld [vmem:[%s4396_s12 + $0x8] sm:$0xff] }
 0x2a7   : > { %3114 = vmatprep.mubr.msk.f32.mxu1 %vm1221_vm1, %v1219_v60  ;;  %v3453_v60 = vpack.c.bf16 %v1802_v59, %v1801_v58  ;;  %v1488_v56 = vld [vmem:[%s4391_s24 + $0x48] sm:$0xff]  ;;  %v1490_v58 = vld [vmem:[%s4391_s24 + $0x58] sm:$0xff]  ;;  %v3489_v59 = vpack.c.bf16 %v2046_v48, %v2045_v47 }
 0x2a8   : > { %v2050_v47 = vld [vmem:[%s4917_s22 + $0x38] sm:$0xff] }
 0x2a9   : > { %3454 = vmatprep.subr.bf16.mxu1 %v3453_v60 }
 0x2aa   : > { %3115 = vmatmul.mubr.msk.f32.gmra.mrb[24].mxu1 %vm1221_vm1, %v1220_v61  ;;  %v1803_v61 = vld [vmem:[%s4396_s12 + $0x10] sm:$0xff] }
 0x2ab   : > { %v3457_v1 = vpack.c.bf16 %v1804_v62, %v1803_v61  ;;  %v2047_v61 = vld [vmem:[%s4917_s22 + $0x20] sm:$0xff]  ;;  %v2048_v62 = vld [vmem:[%s4917_s22 + $0x28] sm:$0xff] }
 0x351   : > { %v3083_v63 = vpop.f32.mrb[2].mxu1 }
 0x352   : > { %v1360_v0 = vpop.f32.mrb[3].mxu1 }
 0x353   : > { %3149 = vmatprep.mubr.f32.mxu1 %v1360_v0  ;;  %v3397_v0 = vpack.c.bf16 %v1490_v58, %v1488_v56  ;;  %v2053_v56 = vld [vmem:[%s4917_s22 + $0x50] sm:$0xff] }
 0x354   : > { %3150 = vmatmul.mubr.f32.vlgmr.msra.gmra.mrb[26].mxu1 %v3083_v63 }
 0x355   : > { %v3086_v4 = vpop.f32.mrb[4].mxu1  ;;  %3456 = vmatpush3.bf16.msra.mxu1 %v3453_v60  ;;  %v3395_v60 = vpack.c.bf16 %v1485_v54, %v1483_v53  ;;  %v2052_v53 = vld [vmem:[%s4917_s22 + $0x48] sm:$0xff] }
 0x356   : > { %v1370_v5 = vpop.f32.mrb[5].mxu1  ;;  %3458 = vmatprep.subr.bf16.mxu1 %v3457_v1 }
 0x357   : > { %3152 = vmatprep.mubr.f32.mxu1 %v1370_v5  ;;  %v1494_v5 = vld [vmem:[%s4391_s24 + $0x78] sm:$0xff] }
 0x358   : > { %3153 = vmatmul.mubr.f32.gmra.mrb[28].mxu1 %v3086_v4  ;;  %v1492_v4 = vld [vmem:[%s4391_s24 + $0x68] sm:$0xff] }
 0x359   : > { %v3089_v9 = vpop.f32.mrb[6].mxu1  ;;  %3460 = vmatpush3.bf16.msra.mxu1 %v3457_v1  ;;  %v1487_v1 = vld [vmem:[%s4391_s24 + $0x40] sm:$0xff]  ;;  %v3401_v8 = vpack.c.bf16 %v1494_v5, %v1492_v4 }
 0x35a   : > { %v1380_v10 = vpop.f32.mrb[7].mxu1  ;;  %3462 = vmatprep.subr.bf16.mxu1 %v3461_v6  ;;  %v3399_v7 = vpack.c.bf16 %v1489_v2, %v1487_v1 }
 0x35b   : > { %3155 = vmatprep.mubr.f32.mxu1 %v1380_v10 }
 0x35c   : > { %3156 = vmatmul.mubr.f32.gmra.mrb[30].mxu1 %v3089_v9  ;;  %v1493_v9 = vld [vmem:[%s4391_s24 + $0x70] sm:$0xff] }
 0x35d   : > { %v3092_v14 = vpop.f32.mrb[8].mxu1  ;;  %3464 = vmatpush3.bf16.msra.mxu1 %v3461_v6  ;;  %v3493_v6 = vpack.c.bf16 %v2048_v62, %v2047_v61  ;;  %v2057_v62 = vld [vmem:[%s4917_s22 + $0x70] sm:$0xff] }
 0x35e   : > { %v1390_v15 = vpop.f32.mrb[9].mxu1  ;;  %3466 = vmatprep.subr.bf16.mxu1 %v3465_v11 }
 0x35f   : > { %3158 = vmatprep.mubr.f32.mxu1 %v1390_v15  ;;  %v1497_v15 = vld [vmem:[%s4391_s24 + $0x90] sm:$0xff] }
 0x360   : > { %3159 = vmatmul.mubr.f32.gmra.mrb[32].mxu1 %v3092_v14 }
 0x361   : > { %v4605_v19 = vpop.f32.mrb[10].mxu1  ;;  %3468 = vmatpush3.bf16.msra.mxu1 %v3465_v11  ;;  %3193 = vmatprep.mubr.f32.mxu1 %v4468_v32  ;;  %v1815_v32 = vld [vmem:[%s4396_s12 + $0x70] sm:$0xff]  ;;  %s4918_s12 = sld [smem:[#allocation26_spill]] }
 0x362   : > { %v4608_v20 = vpop.f32.mrb[11].mxu1  ;;  %3470 = vmatprep.subr.bf16.mxu1 %v3469_v16  ;;  %v3481_v37 = vpack.c.bf16 %v1816_v36, %v1815_v32  ;;  %v1506_v32 = vld [vmem:[%s4391_s24 + $0xd8] sm:$0xff] }
 0x365   : > { %v4612_v35 = vpop.f32.mrb[12].mxu1  ;;  %3472 = vmatpush3.bf16.msra.mxu1 %v3469_v16 }
 0x366   : > { %v4614_v22 = vpop.f32.mrb[13].mxu1  ;;  %3474 = vmatprep.subr.bf16.mxu1 %v3473_v21 }
 0x367   : > { %v2195_v2 = vld [vmem:[%s4918_s12] sm:$0xff]  ;;  %v2196_v4 = vld [vmem:[%s4918_s12 + $0x8] sm:$0xff]  ;;  %v2197_v5 = vld [vmem:[%s4918_s12 + $0x10] sm:$0xff] }
 0x369   : > { %v4618_v24 = vpop.f32.mrb[14].mxu1  ;;  %3476 = vmatpush3.bf16.msra.mxu1 %v3473_v21 }
 0x36a   : > { %v4620_v25 = vpop.f32.mrb[15].mxu1  ;;  %3478 = vmatprep.subr.bf16.mxu1 %v3477_v23 }
 0x36d   : > { %v4624_v39 = vpop.f32.mrb[16].mxu1  ;;  %3480 = vmatpush3.bf16.msra.mxu1 %v3477_v23  ;;  %v1504_v23 = vld [vmem:[%s4391_s24 + $0xc8] sm:$0xff] }
 0x36e   : > { %v4628_v43 = vpop.f32.mrb[17].mxu1  ;;  %3482 = vmatprep.subr.bf16.mxu1 %v3481_v37  ;;  %v3413_v36 = vpack.c.bf16 %v1506_v32, %v1504_v23 }
 0x371   : > { %v4634_v51 = vpop.f32.mrb[18].mxu1  ;;  %3484 = vmatpush3.bf16.msra.mxu1 %v3481_v37  ;;  %v1503_v37 = vld [vmem:[%s4391_s24 + $0xc0] sm:$0xff] }
 0x372   : > { %v4638_v55 = vpop.f32.mrb[19].mxu1  ;;  %3486 = vmatprep.subr.bf16.mxu1 %v3485_v45 }
 0x373   : > { %1608 = vmatmul.mubr.f32.vlgmr.msra.gmra.mrb[0].mxu0 %v4638_v55 }
 0x374   : > { %3392 = vmatpush1.bf16.msra.mxu0 %v3391_v46  ;;  %1613 = vmatprep.mubr.f32.mxu0 %v3977_v57  ;;  %v2049_v46 = vld [vmem:[%s4917_s22 + $0x30] sm:$0xff] }
 0x375   : > { %3394 = vmatprep.subr.bf16.mxu0 %v3393_v52  ;;  %v4646_v63 = vpop.f32.mrb[20].mxu1  ;;  %3194 = vmatmul.mubr.f32.vlgmr.msra.gmra.mrb[26].mxu1 %v4472_v34  ;;  %v1491_v34 = vld [vmem:[%s4391_s24 + $0x60] sm:$0xff]  ;;  %v3497_v48 = vpack.c.bf16 %v2050_v47, %v2049_v46 }
 0x376   : > { %v4651_v3 = vpop.f32.mrb[21].mxu1  ;;  %3488 = vmatpush3.bf16.msra.mxu1 %v3485_v45  ;;  %3196 = vmatprep.mubr.f32.mxu1 %v4466_v30  ;;  %v1496_v30 = vld [vmem:[%s4391_s24 + $0x88] sm:$0xff]  ;;  %v3403_v13 = vpack.c.bf16 %v1493_v9, %v1491_v34  ;;  %v3419_v45 = vpack.c.bf16 %v1509_v28, %v1507_v44  ;;  %v2051_v52 = vld [vmem:[%s4917_s22 + $0x40] sm:$0xff] }
 0x377   : > { %1614 = vmatmul.mubr.f32.gmra.mrb[2].mxu0 %v4634_v51  ;;  %3490 = vmatprep.subr.bf16.mxu1 %v3489_v59  ;;  %v3405_v14 = vpack.c.bf16 %v1498_v12, %v1496_v30  ;;  %v3501_v54 = vpack.c.bf16 %v2052_v53, %v2051_v52  ;;  %v2199_v34 = vld [vmem:[%s4918_s12 + $0x20] sm:$0xff]  ;;  %v2200_v9 = vld [vmem:[%s4918_s12 + $0x28] sm:$0xff]  ;;  %v2201_v12 = vld [vmem:[%s4918_s12 + $0x30] sm:$0xff] }
 0x378   : > { %3396 = vmatpush1.bf16.msra.mxu0 %v3395_v60  ;;  %1619 = vmatprep.mubr.f32.mxu0 %v3977_v57  ;;  %v2056_v60 = vld [vmem:[%s4917_s22 + $0x68] sm:$0xff]  ;;  %v3525_v30 = vpack.c.bf16 %v2200_v9, %v2199_v34  ;;  %v2210_v9 = vld [vmem:[%s4918_s12 + $0x78] sm:$0xff] }
 0x379   : > { %3398 = vmatprep.subr.bf16.mxu0 %v3397_v0  ;;  %v4660_v10 = vpop.f32.mrb[22].mxu1  ;;  %3197 = vmatmul.mubr.f32.gmra.mrb[28].mxu1 %v4470_v33  ;;  %v1495_v33 = vld [vmem:[%s4391_s24 + $0x80] sm:$0xff]  ;;  %v2058_v0 = vld [vmem:[%s4917_s22 + $0x78] sm:$0xff] }
 0x37a   : > { %v4663_v11 = vpop.f32.mrb[23].mxu1  ;;  %3492 = vmatpush3.bf16.msra.mxu1 %v3489_v59  ;;  %3199 = vmatprep.mubr.f32.mxu1 %v4480_v42  ;;  %v1500_v42 = vld [vmem:[%s4391_s24 + $0xa8] sm:$0xff]  ;;  %v3407_v21 = vpack.c.bf16 %v1497_v15, %v1495_v33  ;;  %v2055_v59 = vld [vmem:[%s4917_s22 + $0x60] sm:$0xff]  ;;  %v3513_v1 = vpack.c.bf16 %v2058_v0, %v2057_v62 }
 0x37b   : > { %1620 = vmatmul.mubr.f32.gmra.mrb[4].mxu0 %v4651_v3  ;;  %3494 = vmatprep.subr.bf16.mxu1 %v3493_v6  ;;  %v3509_v61 = vpack.c.bf16 %v2056_v60, %v2055_v59  ;;  %v2203_v33 = vld [vmem:[%s4918_s12 + $0x40] sm:$0xff]  ;;  %v2204_v15 = vld [vmem:[%s4918_s12 + $0x48] sm:$0xff] }
 0x37c   : > { %3400 = vmatpush1.bf16.msra.mxu0 %v3399_v7  ;;  %1625 = vmatprep.mubr.f32.mxu0 %v3977_v57  ;;  %v2198_v7 = vld [vmem:[%s4918_s12 + $0x18] sm:$0xff] }
 0x37d   : > { %3402 = vmatprep.subr.bf16.mxu0 %v3401_v8  ;;  %v4672_v16 = vpop.f32.mrb[24].mxu1  ;;  %3200 = vmatmul.mubr.f32.gmra.mrb[30].mxu1 %v4478_v41  ;;  %v3409_v41 = vpack.c.bf16 %v1502_v17, %v1500_v42  ;;  %v3521_v8 = vpack.c.bf16 %v2198_v7, %v2197_v5  ;;  %v3533_v42 = vpack.c.bf16 %v2204_v15, %v2203_v33  ;;  %v2205_v17 = vld [vmem:[%s4918_s12 + $0x50] sm:$0xff] }
 0x37e   : > { %v4677_v18 = vpop.f32.mrb[25].mxu1  ;;  %3496 = vmatpush3.bf16.msra.mxu1 %v3493_v6  ;;  %3202 = vmatprep.mubr.f32.mxu1 %v4486_v50  ;;  %v3411_v50 = vpack.c.bf16 %v1501_v31, %v1499_v29  ;;  %v3517_v6 = vpack.c.bf16 %v2196_v4, %v2195_v2  ;;  %v2207_v29 = vld [vmem:[%s4918_s12 + $0x60] sm:$0xff]  ;;  %v2208_v31 = vld [vmem:[%s4918_s12 + $0x68] sm:$0xff] }
 0x37f   : > { %1626 = vmatmul.mubr.f32.gmra.mrb[6].mxu0 %v4646_v63  ;;  %3498 = vmatprep.subr.bf16.mxu1 %v3497_v48  ;;  %v3541_v23 = vpack.c.bf16 %v2208_v31, %v2207_v29 }
 0x380   : > { %3404 = vmatpush1.bf16.msra.mxu0 %v3403_v13  ;;  %1631 = vmatprep.mubr.f32.mxu0 %v3977_v57  ;;  %v2202_v13 = vld [vmem:[%s4918_s12 + $0x38] sm:$0xff] }
 0x381   : > { %3406 = vmatprep.subr.bf16.mxu0 %v3405_v14  ;;  %3203 = vmatmul.mubr.f32.gmra.mrb[32].mxu1 %v4484_v49  ;;  %v3415_v49 = vpack.c.bf16 %v1505_v38, %v1503_v37  ;;  %v3529_v14 = vpack.c.bf16 %v2202_v13, %v2201_v12  ;;  %v2332_v12 = vld [vmem:[%s4416_s25 + $0x8] sm:$0xff] }
 0x382   : > { %3500 = vmatpush3.bf16.msra.mxu1 %v3497_v48 }
 0x383   : > { %1632 = vmatmul.mubr.f32.gmra.mrb[8].mxu0 %v4663_v11  ;;  %3502 = vmatprep.subr.bf16.mxu1 %v3501_v54 }
 0x384   : > { %3408 = vmatpush1.bf16.msra.mxu0 %v3407_v21  ;;  %1637 = vmatprep.mubr.f32.mxu0 %v3977_v57  ;;  %v2206_v21 = vld [vmem:[%s4918_s12 + $0x58] sm:$0xff] }
 0x385   : > { %3410 = vmatprep.subr.bf16.mxu0 %v3409_v41  ;;  %v3537_v41 = vpack.c.bf16 %v2206_v21, %v2205_v17  ;;  %v2333_v21 = vld [vmem:[%s4416_s25 + $0x10] sm:$0xff] }
 0x386   : > { %3504 = vmatpush3.bf16.msra.mxu1 %v3501_v54 }
 0x387   : > { %1638 = vmatmul.mubr.f32.gmra.mrb[10].mxu0 %v4660_v10 }
 0x388   : > { %3412 = vmatpush1.bf16.msra.mxu0 %v3411_v50  ;;  %1643 = vmatprep.mubr.f32.mxu0 %v3977_v57 }
 0x389   : > { %3414 = vmatprep.subr.bf16.mxu0 %v3413_v36 }
 0x38b   : > { %1644 = vmatmul.mubr.f32.gmra.mrb[12].mxu0 %v4677_v18 }
 0x38c   : > { %3416 = vmatpush1.bf16.msra.mxu0 %v3415_v49  ;;  %1649 = vmatprep.mubr.f32.mxu0 %v3977_v57 }
 0x38d   : > { %3418 = vmatprep.subr.bf16.mxu0 %v3417_v40 }
 0x38f   : > { %1650 = vmatmul.mubr.f32.gmra.mrb[14].mxu0 %v4672_v16 }
 0x390   : > { %3420 = vmatpush1.bf16.msra.mxu0 %v3419_v45  ;;  %1720 = vmatprep.mubr.f32.mxu0 %v3977_v57 }
 0x391   : > { %3518 = vmatprep.subr.bf16.mxu0 %v3517_v6 }
 0x393   : > { %1721 = vmatmul.mubr.f32.vlgmr.msra.gmra.mrb[0].mxu0 %v4608_v20 }
 0x394   : > { %1726 = vmatprep.mubr.f32.mxu0 %v3977_v57  ;;  %3520 = vmatpush3.bf16.msra.mxu0 %v3517_v6 }
 0x395   : > { %3522 = vmatprep.subr.bf16.mxu0 %v3521_v8 }
 0x397   : > { %1727 = vmatmul.mubr.f32.gmra.mrb[2].mxu0 %v4605_v19 }
 0x398   : > { %1732 = vmatprep.mubr.f32.mxu0 %v3977_v57  ;;  %3524 = vmatpush3.bf16.msra.mxu0 %v3521_v8 }
 0x399   : > { %3526 = vmatprep.subr.bf16.mxu0 %v3525_v30 }
 0x39b   : > { %1733 = vmatmul.mubr.f32.gmra.mrb[4].mxu0 %v4614_v22 }
 0x39c   : > { %1738 = vmatprep.mubr.f32.mxu0 %v3977_v57  ;;  %3528 = vmatpush3.bf16.msra.mxu0 %v3525_v30 }
 0x39d   : > { %3530 = vmatprep.subr.bf16.mxu0 %v3529_v14 }
 0x39f   : > { %1739 = vmatmul.mubr.f32.gmra.mrb[6].mxu0 %v4612_v35 }
 0x3a0   : > { %1744 = vmatprep.mubr.f32.mxu0 %v3977_v57  ;;  %3532 = vmatpush3.bf16.msra.mxu0 %v3529_v14  ;;  %v2892_v14 = vld [vmem:[%s941_s0] ss:$0 sm:$0xff] }
 0x3a1   : > { %3534 = vmatprep.subr.bf16.mxu0 %v3533_v42 }
 0x3a3   : > { %1745 = vmatmul.mubr.f32.gmra.mrb[8].mxu0 %v4620_v25 }
 0x3a4   : > { %1750 = vmatprep.mubr.f32.mxu0 %v3977_v57  ;;  %3536 = vmatpush3.bf16.msra.mxu0 %v3533_v42 }
 0x3a5   : > { %3538 = vmatprep.subr.bf16.mxu0 %v3537_v41 }
 0x3a7   : > { %1751 = vmatmul.mubr.f32.gmra.mrb[10].mxu0 %v4618_v24 }
 0x3a8   : > { %1756 = vmatprep.mubr.f32.mxu0 %v3977_v57  ;;  %3540 = vmatpush3.bf16.msra.mxu0 %v3537_v41  ;;  %v2334_v41 = vld [vmem:[%s4416_s25 + $0x18] sm:$0xff] }
 0x3a9   : > { %3542 = vmatprep.subr.bf16.mxu0 %v3541_v23 }
 0x3ab   : > { %1757 = vmatmul.mubr.f32.gmra.mrb[12].mxu0 %v4628_v43 }
 0x3ac   : > { %1762 = vmatprep.mubr.f32.mxu0 %v3977_v57  ;;  %v2054_v57 = vld [vmem:[%s4917_s22 + $0x58] sm:$0xff]  ;;  %3544 = vmatpush3.bf16.msra.mxu0 %v3541_v23  ;;  %v3553_v23 = vpack.c.bf16 %v2334_v41, %v2333_v21 }
 0x3ad   : > { %v3505_v58 = vpack.c.bf16 %v2054_v57, %v2053_v56 }
 0x3af   : > { %1763 = vmatmul.mubr.f32.gmra.mrb[14].mxu0 %v4624_v39  ;;  %3506 = vmatprep.subr.bf16.mxu1 %v3505_v58 }
 0x3b0   : > { %3508 = vmatpush3.bf16.msra.mxu1 %v3505_v58 }
 0x3b1   : > { %3510 = vmatprep.subr.bf16.mxu1 %v3509_v61 }
 0x3b4   : > { %3512 = vmatpush3.bf16.msra.mxu1 %v3509_v61 }
 0x3b5   : > { %3514 = vmatprep.subr.bf16.mxu1 %v3513_v1 }
 0x3b8   : > { %3516 = vmatpush3.bf16.msra.mxu1 %v3513_v1 }
 0x466   : > { %v1722_v32 = vpop.f32.mrb[0].mxu0 }
 0x467   : > { %v1769_v50 = vmul.f32 %v1722_v32, %v4608_v20  ;;  %v1724_v36 = vpop.f32.mrb[1].mxu0  ;;  %v2335_v32 = vld [vmem:[%s4416_s25 + $0x20] sm:$0xff] }
 0x468   : > { %v1777_v37 = vmul.f32 %v1724_v36, %v4638_v55 }
 0x46a   : > { %v1785_v38 = vadd.f32 %v1777_v37, %v1769_v50  ;;  %v1728_v26 = vpop.f32.mrb[2].mxu0  ;;  %v2336_v50 = vld [vmem:[%s4416_s25 + $0x28] sm:$0xff] }
 0x46b   : > { %v1770_v27 = vmul.f32 %v4605_v19, %v1728_v26  ;;  %v1730_v49 = vpop.f32.mrb[3].mxu0  ;;  %v3557_v26 = vpack.c.bf16 %v2336_v50, %v2335_v32 }
 0x46c   : > { %3717 = vtanh.f32 %v1785_v38  ;;  %v1778_v40 = vmul.f32 %v4634_v51, %v1730_v49  ;;  %v2337_v49 = vld [vmem:[%s4416_s25 + $0x30] sm:$0xff] }
 0x46e   : > { %v1786_v44 = vadd.f32 %v1778_v40, %v1770_v27  ;;  %v1734_v28 = vpop.f32.mrb[4].mxu0  ;;  %v2338_v40 = vld [vmem:[%s4416_s25 + $0x38] sm:$0xff] }
 0x46f   : > { %v1771_v45 = vmul.f32 %v1734_v28, %v4614_v22  ;;  %v1736_v46 = vpop.f32.mrb[5].mxu0 }
 0x470   : > { %3719 = vtanh.f32 %v1786_v44  ;;  %v1779_v47 = vmul.f32 %v1736_v46, %v4651_v3  ;;  %v2339_v46 = vld [vmem:[%s4416_s25 + $0x40] sm:$0xff] }
 0x472   : > { %v1787_v20 = vadd.f32 %v1779_v47, %v1771_v45  ;;  %v1740_v48 = vpop.f32.mrb[6].mxu0  ;;  %v3561_v45 = vpack.c.bf16 %v2338_v40, %v2337_v49  ;;  %v2340_v47 = vld [vmem:[%s4416_s25 + $0x48] sm:$0xff] }
 0x473   : > { %v1772_v55 = vmul.f32 %v4612_v35, %v1740_v48  ;;  %v1742_v52 = vpop.f32.mrb[7].mxu0 }
 0x474   : > { %3721 = vtanh.f32 %v1787_v20  ;;  %v1780_v19 = vmul.f32 %v4646_v63, %v1742_v52  ;;  %v3565_v52 = vpack.c.bf16 %v2340_v47, %v2339_v46  ;;  %v3736_v46 = vld [vmem:[#allocation2 + $0x10] sm:$0xff] }
 0x476   : > { %v3718_v53 = vpop.eup %3717  ;;  %v1788_v54 = vadd.f32 %v1780_v19, %v1772_v55  ;;  %v1746_v56 = vpop.f32.mrb[8].mxu0 }
 0x477   : > { %v1773_v51 = vmul.f32 %v1746_v56, %v4620_v25  ;;  %v1748_v57 = vpop.f32.mrb[9].mxu0  ;;  %3237 = vmatprep.mubr.f32.mxu1 %v3718_v53  ;;  %v2341_v53 = vld [vmem:[%s4416_s25 + $0x50] sm:$0xff] }
 0x478   : > { %3723 = vtanh.f32 %v1788_v54  ;;  %v1781_v22 = vmul.f32 %v1748_v57, %v4663_v11  ;;  %v2342_v54 = vld [vmem:[%s4416_s25 + $0x58] sm:$0xff] }
 0x479   : > { %v3569_v57 = vpack.c.bf16 %v2342_v54, %v2341_v53  ;;  %v3738_v54 = vld [vmem:[#allocation2 + $0x20] sm:$0xff] }
 0x47a   : > { %v3720_v58 = vpop.eup %3719  ;;  %v1789_v3 = vadd.f32 %v1781_v22, %v1773_v51  ;;  %v1752_v59 = vpop.f32.mrb[10].mxu0  ;;  %v2343_v22 = vld [vmem:[%s4416_s25 + $0x60] sm:$0xff] }
 0x47b   : > { %v1774_v60 = vmul.f32 %v4618_v24, %v1752_v59  ;;  %v1754_v35 = vpop.f32.mrb[11].mxu0  ;;  %3238 = vmatmul.mubr.f32.vlgmr.msra.gmra.mrb[26].mxu1 %v3720_v58  ;;  %v2344_v58 = vld [vmem:[%s4416_s25 + $0x68] sm:$0xff] }
 0x47c   : > { %3725 = vtanh.f32 %v1789_v3  ;;  %v1782_v63 = vmul.f32 %v4660_v10, %v1754_v35  ;;  %v3573_v35 = vpack.c.bf16 %v2344_v58, %v2343_v22 }
 0x47e   : > { %v3722_v61 = vpop.eup %3721  ;;  %v1790_v62 = vadd.f32 %v1782_v63, %v1774_v60  ;;  %v1758_v0 = vpop.f32.mrb[12].mxu0 }
 0x47f   : > { %v1775_v25 = vmul.f32 %v1758_v0, %v4628_v43  ;;  %v1760_v1 = vpop.f32.mrb[13].mxu0  ;;  %3240 = vmatprep.mubr.f32.mxu1 %v3722_v61  ;;  %v2345_v0 = vld [vmem:[%s4416_s25 + $0x70] sm:$0xff] }
 0x480   : > { %3727 = vtanh.f32 %v1790_v62  ;;  %v1783_v11 = vmul.f32 %v1760_v1, %v4677_v18 }
 0x482   : > { %v3724_v2 = vpop.eup %3723  ;;  %v1791_v4 = vadd.f32 %v1783_v11, %v1775_v25  ;;  %v1764_v5 = vpop.f32.mrb[14].mxu0  ;;  %v2346_v25 = vld [vmem:[%s4416_s25 + $0x78] sm:$0xff]  ;;  %v2893_v11 = vld [vmem:[%s948_s7] ss:$0 sm:$0xff] }
 0x483   : > { %v1776_v24 = vmul.f32 %v4624_v39, %v1764_v5  ;;  %v1766_v6 = vpop.f32.mrb[15].mxu0  ;;  %3241 = vmatmul.mubr.f32.gmra.mrb[28].mxu1 %v3724_v2  ;;  %v2209_v39 = vld [vmem:[%s4918_s12 + $0x70] sm:$0xff]  ;;  %v3577_v1 = vpack.c.bf16 %v2346_v25, %v2345_v0 }
 0x484   : > { %3729 = vtanh.f32 %v1791_v4  ;;  %v1784_v10 = vmul.f32 %v4672_v16, %v1766_v6  ;;  %v3545_v30 = vpack.c.bf16 %v2210_v9, %v2209_v39  ;;  %v2331_v16 = vld [vmem:[%s4416_s25] sm:$0xff] }
 0x485   : > { %v3549_v13 = vpack.c.bf16 %v2332_v12, %v2331_v16 }
 0x486   : > { %v3726_v7 = vpop.eup %3725  ;;  %v1792_v43 = vadd.f32 %v1784_v10, %v1776_v24  ;;  %3546 = vmatprep.subr.bf16.mxu0 %v3545_v30 }
 0x487   : > { %3243 = vmatprep.mubr.f32.mxu1 %v3726_v7  ;;  %3548 = vmatpush3.bf16.msra.mxu0 %v3545_v30 }
 0x488   : > { %3731 = vtanh.f32 %v1792_v43  ;;  %3550 = vmatprep.subr.bf16.mxu0 %v3549_v13 }
 0x48a   : > { %v3728_v18 = vpop.eup %3727 }
 0x48b   : > { %3244 = vmatmul.mubr.f32.gmra.mrb[30].mxu1 %v3728_v18 }
 0x48e   : > { %v3730_v8 = vpop.eup %3729 }
 0x48f   : > { %3246 = vmatprep.mubr.f32.mxu1 %v3730_v8 }
 0x492   : > { %v3732_v34 = vpop.eup %3731 }
 0x493   : > { %3247 = vmatmul.mubr.f32.gmra.mrb[32].mxu1 %v3732_v34 }
 0x54e   : > { %v3239_v33 = vpop.f32.mrb[26].mxu1 }
 0x54f   : > { %v2180_v15 = vadd.f32 %v3239_v33, %v2892_v14  ;;  %v2125_v42 = vpop.f32.mrb[27].mxu1 }
 0x550   : > { %v2179_v17 = vadd.f32 %v2892_v14, %v2125_v42 }
 0x551   : > { %v2188_v31 = vmax.f32 %v2180_v15, 0.0 }
 0x552   : > { %v2187_v29 = vmax.f32 %v2179_v17, 0.0 }
 0x554   : > { %3281 = vmatprep.mubr.f32.mxu0 %v2187_v29  ;;  %v2894_v29 = vld [vmem:[%s955_s19] ss:$0 sm:$0xff] }
 0x555   : > { %3282 = vmatmul.mubr.f32.vlgmr.msra.gmra.mrb[16].mxu0 %v2188_v31 }
 0x556   : > { %v3242_v36 = vpop.f32.mrb[28].mxu1  ;;  %3552 = vmatpush3.bf16.msra.mxu0 %v3549_v13 }
 0x557   : > { %v2182_v37 = vadd.f32 %v3242_v36, %v2892_v14  ;;  %v2135_v38 = vpop.f32.mrb[29].mxu1  ;;  %3554 = vmatprep.subr.bf16.mxu0 %v3553_v23  ;;  %v3733_v36 = vld [vmem:[#allocation2 + $0x8] sm:$0xff] }
 0x558   : > { %v2181_v27 = vadd.f32 %v2892_v14, %v2135_v38  ;;  %v3734_v38 = vld [vmem:[#allocation2] sm:$0xff] }
 0x559   : > { %v2190_v28 = vmax.f32 %v2182_v37, 0.0 }
 0x55a   : > { %v2189_v44 = vmax.f32 %v2181_v27, 0.0  ;;  %3556 = vmatpush3.bf16.msra.mxu0 %v3553_v23 }
 0x55b   : > { %3558 = vmatprep.subr.bf16.mxu0 %v3557_v26 }
 0x55c   : > { %3284 = vmatprep.mubr.f32.mxu0 %v2189_v44 }
 0x55d   : > { %3285 = vmatmul.mubr.f32.gmra.mrb[18].mxu0 %v2190_v28  ;;  %v3735_v28 = vld [vmem:[#allocation2 + $0x18] sm:$0xff] }
 0x55e   : > { %v3245_v20 = vpop.f32.mrb[30].mxu1  ;;  %3560 = vmatpush3.bf16.msra.mxu0 %v3557_v26 }
 0x55f   : > { %v2184_v48 = vadd.f32 %v3245_v20, %v2892_v14  ;;  %v2145_v55 = vpop.f32.mrb[31].mxu1  ;;  %3562 = vmatprep.subr.bf16.mxu0 %v3561_v45 }
 0x560   : > { %v2183_v19 = vadd.f32 %v2892_v14, %v2145_v55 }
 0x561   : > { %v2192_v51 = vmax.f32 %v2184_v48, 0.0 }
 0x562   : > { %v2191_v56 = vmax.f32 %v2183_v19, 0.0  ;;  %3564 = vmatpush3.bf16.msra.mxu0 %v3561_v45  ;;  %v3737_v19 = vld [vmem:[#allocation2 + $0x28] sm:$0xff] }
 0x563   : > { %3566 = vmatprep.subr.bf16.mxu0 %v3565_v52 }
 0x564   : > { %3287 = vmatprep.mubr.f32.mxu0 %v2191_v56 }
 0x565   : > { %3288 = vmatmul.mubr.f32.gmra.mrb[20].mxu0 %v2192_v51 }
 0x566   : > { %v3248_v3 = vpop.f32.mrb[32].mxu1  ;;  %3568 = vmatpush3.bf16.msra.mxu0 %v3565_v52 }
 0x567   : > { %v2186_v59 = vadd.f32 %v3248_v3, %v2892_v14  ;;  %v2155_v60 = vpop.f32.mrb[33].mxu1  ;;  %3570 = vmatprep.subr.bf16.mxu0 %v3569_v57  ;;  %v3739_v3 = vld [vmem:[#allocation2 + $0x38] sm:$0xff] }
 0x568   : > { %v2185_v63 = vadd.f32 %v2892_v14, %v2155_v60  ;;  %v3740_v60 = vld [vmem:[#allocation2 + $0x30] sm:$0xff] }
 0x569   : > { %v2194_v62 = vmax.f32 %v2186_v59, 0.0 }
 0x56a   : > { %v2193_v61 = vmax.f32 %v2185_v63, 0.0  ;;  %3572 = vmatpush3.bf16.msra.mxu0 %v3569_v57 }
 0x56b   : > { %3574 = vmatprep.subr.bf16.mxu0 %v3573_v35 }
 0x56c   : > { %3290 = vmatprep.mubr.f32.mxu0 %v2193_v61 }
 0x56d   : > { %3291 = vmatmul.mubr.f32.gmra.mrb[22].mxu0 %v2194_v62 }
 0x56e   : > { %3576 = vmatpush3.bf16.msra.mxu0 %v3573_v35 }
 0x56f   : > { %3578 = vmatprep.subr.bf16.mxu0 %v3577_v1 }
 0x572   : > { %3580 = vmatpush3.bf16.msra.mxu0 %v3577_v1 }
 0x628   : > { %v3283_v2 = vpop.f32.mrb[16].mxu0 }
 0x629   : > { %v2290_v4 = vadd.f32 %v3283_v2, %v2893_v11  ;;  %v2284_v5 = vpop.f32.mrb[17].mxu0 }
 0x62a   : > { %v2285_v24 = vadd.f32 %v2893_v11, %v2284_v5 }
 0x62b   : > { %v2324_v10 = vmax.f32 %v2290_v4, 0.0 }
 0x62c   : > { %v2323_v6 = vmax.f32 %v2285_v24, 0.0 }
 0x62e   : > { %3325 = vmatprep.mubr.f32.mxu0 %v2323_v6 }
 0x62f   : > { %3326 = vmatmul.mubr.f32.vlgmr.msra.gmra.mrb[24].mxu0 %v2324_v10 }
 0x630   : > { %v3286_v7 = vpop.f32.mrb[18].mxu0 }
 0x631   : > { %v2300_v43 = vadd.f32 %v3286_v7, %v2893_v11  ;;  %v2294_v18 = vpop.f32.mrb[19].mxu0 }
 0x632   : > { %v2295_v8 = vadd.f32 %v2893_v11, %v2294_v18 }
 0x633   : > { %v2326_v39 = vmax.f32 %v2300_v43, 0.0 }
 0x634   : > { %v2325_v34 = vmax.f32 %v2295_v8, 0.0 }
 0x636   : > { %3328 = vmatprep.mubr.f32.mxu0 %v2325_v34 }
 0x637   : > { %3329 = vmatmul.mubr.f32.gmra.mrb[26].mxu0 %v2326_v39 }
 0x638   : > { %v3289_v9 = vpop.f32.mrb[20].mxu0 }
 0x639   : > { %v2310_v30 = vadd.f32 %v3289_v9, %v2893_v11  ;;  %v2304_v16 = vpop.f32.mrb[21].mxu0 }
 0x63a   : > { %v2305_v12 = vadd.f32 %v2893_v11, %v2304_v16 }
 0x63b   : > { %v2328_v14 = vmax.f32 %v2310_v30, 0.0 }
 0x63c   : > { %v2327_v13 = vmax.f32 %v2305_v12, 0.0 }
 0x63e   : > { %3331 = vmatprep.mubr.f32.mxu0 %v2327_v13 }
 0x63f   : > { %3332 = vmatmul.mubr.f32.gmra.mrb[28].mxu0 %v2328_v14 }
 0x640   : > { %v3292_v33 = vpop.f32.mrb[22].mxu0 }
 0x641   : > { %v2320_v15 = vadd.f32 %v3292_v33, %v2893_v11  ;;  %v2314_v42 = vpop.f32.mrb[23].mxu0 }
 0x642   : > { %v2315_v17 = vadd.f32 %v2893_v11, %v2314_v42 }
 0x643   : > { %v2330_v41 = vmax.f32 %v2320_v15, 0.0 }
 0x644   : > { %v2329_v21 = vmax.f32 %v2315_v17, 0.0 }
 0x646   : > { %3334 = vmatprep.mubr.f32.mxu0 %v2329_v21 }
 0x647   : > { %3335 = vmatmul.mubr.f32.gmra.mrb[30].mxu0 %v2330_v41 }
 0x702   : > { %v3327_v31 = vpop.f32.mrb[24].mxu0 }
 0x703   : > { %v2426_v23 = vadd.f32 %v3327_v31, %v2894_v29  ;;  %v2420_v32 = vpop.f32.mrb[25].mxu0 }
 0x704   : > { %v2421_v50 = vadd.f32 %v2894_v29, %v2420_v32 }
 0x705   : > { %v2460_v37 = vadd.f32 %v3733_v36, %v2426_v23 }
 0x706   : > { %v2459_v26 = vadd.f32 %v3734_v38, %v2421_v50 }
 0x707   : > { %2468 = vst [vmem:[#allocation2 + $0x8] sm:$0xff] %v2460_v37  ;;  %2480 = vst [vmem:[%s4413_s13 + $0x8] sm:$0xff] (!%p2895_p1), %v2460_v37 }
 0x708   : > { %2467 = vst [vmem:[#allocation2] sm:$0xff] %v2459_v26  ;;  %2479 = vst [vmem:[%s4413_s13] sm:$0xff] (!%p2895_p1), %v2459_v26 }
 0x70a   : > { %v3330_v27 = vpop.f32.mrb[26].mxu0 }
 0x70b   : > { %v2436_v49 = vadd.f32 %v3330_v27, %v2894_v29  ;;  %v2430_v40 = vpop.f32.mrb[27].mxu0 }
 0x70c   : > { %v2431_v44 = vadd.f32 %v2894_v29, %v2430_v40 }
 0x70d   : > { %v2462_v45 = vadd.f32 %v3735_v28, %v2436_v49 }
 0x70e   : > { %v2461_v47 = vadd.f32 %v3736_v46, %v2431_v44 }
 0x70f   : > { %2470 = vst [vmem:[#allocation2 + $0x18] sm:$0xff] %v2462_v45  ;;  %2482 = vst [vmem:[%s4413_s13 + $0x18] sm:$0xff] (!%p2895_p1), %v2462_v45 }
 0x710   : > { %2469 = vst [vmem:[#allocation2 + $0x10] sm:$0xff] %v2461_v47  ;;  %2481 = vst [vmem:[%s4413_s13 + $0x10] sm:$0xff] (!%p2895_p1), %v2461_v47 }
 0x712   : > { %v3333_v20 = vpop.f32.mrb[28].mxu0 }
 0x713   : > { %v2446_v48 = vadd.f32 %v3333_v20, %v2894_v29  ;;  %v2440_v55 = vpop.f32.mrb[29].mxu0 }
 0x714   : > { %v2441_v52 = vadd.f32 %v2894_v29, %v2440_v55 }
 0x715   : > { %v2464_v53 = vadd.f32 %v3737_v19, %v2446_v48 }
 0x716   : > { %v2463_v56 = vadd.f32 %v3738_v54, %v2441_v52 }
 0x717   : > { %2472 = vst [vmem:[#allocation2 + $0x28] sm:$0xff] %v2464_v53  ;;  %2484 = vst [vmem:[%s4413_s13 + $0x28] sm:$0xff] (!%p2895_p1), %v2464_v53 }
 0x718   : > { %2471 = vst [vmem:[#allocation2 + $0x20] sm:$0xff] %v2463_v56  ;;  %2483 = vst [vmem:[%s4413_s13 + $0x20] sm:$0xff] (!%p2895_p1), %v2463_v56 }
 0x71a   : > { %v3336_v51 = vpop.f32.mrb[30].mxu0  ;;  %2478 = sbr.rel (%p2895_p1) target bundleno = 1825 (0x721), region = 108 }
 0x71b   : > { %v2456_v57 = vadd.f32 %v3336_v51, %v2894_v29  ;;  %v2450_v22 = vpop.f32.mrb[31].mxu0 }
 0x71c   : > { %v2451_v58 = vadd.f32 %v2894_v29, %v2450_v22 }
 0x71d   : > { %v2466_v59 = vadd.f32 %v3739_v3, %v2456_v57 }
 0x71e   : > { %v2465_v35 = vadd.f32 %v3740_v60, %v2451_v58 }
 0x71f   : > { %2474 = vst [vmem:[#allocation2 + $0x38] sm:$0xff] %v2466_v59  ;;  %2486 = vst [vmem:[%s4413_s13 + $0x38] sm:$0xff] (!%p2895_p1), %v2466_v59 }
 0x720   : > { %2473 = vst [vmem:[#allocation2 + $0x30] sm:$0xff] %v2465_v35  ;;  %2485 = vst [vmem:[%s4413_s13 + $0x30] sm:$0xff] (!%p2895_p1), %v2465_v35 }
 0x721 PF: > { %s4923_s30 = sld [smem:[#allocation20_spill]]  ;;  %s4924_s18 = sld [smem:[#allocation14_spill]] }
 0x722   : > { %s4925_s19 = sld [smem:[#allocation15_spill]]  ;;  %s4926_s20 = sld [smem:[#allocation23_spill]] }
 0x723   : > { %s4927_s21 = sld [smem:[#allocation18_spill]]  ;;  %s4928_s22 = sld [smem:[#allocation19_spill]] }
 0x724   : > { %s4929_s23 = sld [smem:[#allocation21_spill]]  ;;  %s4930_s24 = sld [smem:[#allocation22_spill]] }
 0x727   : > { %s34_s25 = sadd.s32 1, %s4923_s30  }
 0x728   : > { %p31_p11 = scmp.ge.s32.totalorder %s34_s25, 10  }
 0x72a   :  { %33 = sbr.rel (!%p31_p11) target bundleno = 26 (0x1a), region = 206 }
 0x731   :  { %2508 = vsyncpa [#allocation4], 1 }
 0x732   :  { %2510 = vsyncpa [#allocation4 + $0x1], 1 }
 0x733   :  { %2511 = vsyncpa [#allocation6], 1 }
 0x734   :  { %2513 = vsyncpa [#allocation6 + $0x1], 1 }
 0x735   :  { %2514 = vsyncpa [#allocation9], 1 }
 0x736   :  { %2516 = vsyncpa [#allocation9 + $0x1], 1 }

</bundles_post_ra>
